<compile_context>
chip_gen: v5e
topology: v5e:2x2
jax: 0.10.0
libtpu: 0.0.40
codegen_flags: <defaults>
</compile_context>

<pallas_src>
import functools

import jax
import jax.numpy as jnp
from jax.experimental import pallas as pl
from jax.experimental.pallas import tpu as pltpu


def _round_up(n, m):
    return ((n + m - 1) // m) * m


# ---------------------------------------------------------------------------
# Kernel
# ---------------------------------------------------------------------------
def _critic_kernel(s_ref, a_ref,
                   w1s_ref, w1a_ref, b1f_ref,   # fused l1|l4, split by input rows
                   w2_ref, b2_ref,              # l2
                   w5_ref, b5_ref,              # l5
                   wout_ref, bout_ref,          # l3/l6 packed as rows
                   out_ref):                    # (TB, 2): q1 | q2
    h1 = b1f_ref.shape[1] // 2

    # Inputs arrive in their natural dtype (f32); cast to bf16 for the MXU
    # inside the kernel (VPU cast, no extra HBM traffic in the wrapper).
    s = s_ref[...].astype(jnp.bfloat16)          # (TB, Ds)
    a = a_ref[...].astype(jnp.bfloat16)          # (TB, Da)

    # ---- fused first layer of both heads. x = [state | action] is never
    # materialized: the [D_in, 2*H1] weight is split by rows and the two
    # partial matmuls accumulate into the same f32 result. ----
    hg = jnp.dot(s, w1s_ref[...], preferred_element_type=jnp.float32)
    hg = hg + jnp.dot(a, w1a_ref[...], preferred_element_type=jnp.float32)
    hg = jnp.maximum(hg + b1f_ref[...], 0.0)     # (TB, 2*H1) f32

    h = hg[:, :h1].astype(jnp.bfloat16)          # Q1 branch (lane-tile aligned)
    g = hg[:, h1:].astype(jnp.bfloat16)          # Q2 branch

    # ---- second layers (f32 bias/ReLU epilogue; hidden under MXU time) ----
    h2 = jnp.dot(h, w2_ref[...], preferred_element_type=jnp.float32)
    h2 = jnp.maximum(h2 + b2_ref[...], 0.0)      # (TB, H2) f32
    g2 = jnp.dot(g, w5_ref[...], preferred_element_type=jnp.float32)
    g2 = jnp.maximum(g2 + b5_ref[...], 0.0)      # (TB, H2) f32

    # ---- final 1-wide projections on VPU/XLU (keeps MXU free); write each
    # q column directly instead of a lane-axis concatenate. ----
    wout = wout_ref[...]                         # (2, H2) f32
    bout = bout_ref[...]                         # (1, 2)  f32
    q1 = jnp.sum(h2 * wout[0:1, :], axis=1, keepdims=True)   # (TB, 1)
    q2 = jnp.sum(g2 * wout[1:2, :], axis=1, keepdims=True)   # (TB, 1)
    out_ref[:, 0:1] = (q1 + bout[:, 0:1]).astype(out_ref.dtype)
    out_ref[:, 1:2] = (q2 + bout[:, 1:2]).astype(out_ref.dtype)


# ---------------------------------------------------------------------------
# One-time parameter packing (hoisted out of the forward path)
# ---------------------------------------------------------------------------
def pack_critic_params(params, state_dim):
    """Pack / pad / cast Critic params for the Pallas kernel. Call ONCE.

    Re-running this per forward call would cost several small XLA kernels and
    a few MiB of HBM traffic, more than the Pallas kernel itself.

    Layout:
      w1s/w1a : fused l1|l4 weights split by input rows (state / action),
                columns zero-padded to H1 = round_up(400, 128) = 512, bf16.
      w2/w5   : zero-padded to (H1, H2=384), bf16.
      wout    : l3/l6 weights packed as two rows of length H2, f32.
      biases  : f32, zero-padded (so padded hidden units stay exactly 0).
    """
    H1 = _round_up(params["w1"].shape[1], 128)   # 400 -> 512
    H2 = _round_up(params["w2"].shape[1], 128)   # 300 -> 384

    def pad2(w, r, c):
        return jnp.pad(w, ((0, r - w.shape[0]), (0, c - w.shape[1])))

    def padc(w, c):
        return jnp.pad(w, ((0, 0), (0, c - w.shape[1])))

    w1, w4 = params["w1"], params["w4"]
    return dict(
        w1s=jnp.concatenate([padc(w1[:state_dim], H1),
                             padc(w4[:state_dim], H1)],
                            axis=1).astype(jnp.bfloat16),
        w1a=jnp.concatenate([padc(w1[state_dim:], H1),
                             padc(w4[state_dim:], H1)],
                            axis=1).astype(jnp.bfloat16),
        b1f=jnp.concatenate([padc(params["b1"], H1),
                             padc(params["b4"], H1)],
                            axis=1).astype(jnp.float32),
        w2=pad2(params["w2"], H1, H2).astype(jnp.bfloat16),
        b2=padc(params["b2"], H2).astype(jnp.float32),
        w5=pad2(params["w5"], H1, H2).astype(jnp.bfloat16),
        b5=padc(params["b5"], H2).astype(jnp.float32),
        wout=jnp.concatenate([padc(params["w3"].T, H2),
                              padc(params["w6"].T, H2)],
                             axis=0).astype(jnp.float32),
        bout=jnp.concatenate([params["b3"], params["b6"]],
                             axis=1).astype(jnp.float32),
    )


# ---------------------------------------------------------------------------
# Forward wrapper
# ---------------------------------------------------------------------------
@functools.partial(jax.jit, static_argnames=("max_batch_tile",))
def critic_forward(state, action_seq, packed, *, max_batch_tile=1024):
    """Equivalent of Critic.forward(state, action_seq) -> (q1, q2).

    `packed` must come from pack_critic_params() (one-time packing).
    """
    B = state.shape[0]
    action_flat = action_seq.reshape(B, -1)                  # .view(B, -1)
    Ds = state.shape[1]
    Da = action_flat.shape[1]
    H1 = packed["b1f"].shape[1] // 2
    H2 = packed["b2"].shape[1]

    # ---- batch tiling ----
    # TB rounded to 16 (bf16 sublane tile).  Small/medium batches split into
    # (up to) two tiles so the "parallel" grid axis can shard across v7x's
    # two TensorCores; large batches use fat tiles to amortize the serial
    # per-step overhead on v5e/v6e.
    B_ceil = _round_up(B, 16)
    if B_ceil <= max_batch_tile:
        TB = _round_up(pl.cdiv(B_ceil, 2), 16)
    else:
        TB = max_batch_tile
    B_pad = _round_up(B, TB)
    if B_pad != B:
        state = jnp.pad(state, ((0, B_pad - B), (0, 0)))
        action_flat = jnp.pad(action_flat, ((0, B_pad - B), (0, 0)))
    grid = (B_pad // TB,)

    in_specs = [
        pl.BlockSpec((TB, Ds), lambda i: (i, 0)),      # state tile (pipelined)
        pl.BlockSpec((TB, Da), lambda i: (i, 0)),      # action tile (pipelined)
        # Weights / biases: constant index_map -> resident in VMEM.
        # TODO(synk): single-buffer these (pipeline_mode=pl.Buffered(1)) if
        # TB is ever raised enough to pressure v7x's 64 MiB VMEM.
        pl.BlockSpec((Ds, 2 * H1), lambda i: (0, 0)),
        pl.BlockSpec((Da, 2 * H1), lambda i: (0, 0)),
        pl.BlockSpec((1, 2 * H1), lambda i: (0, 0)),
        pl.BlockSpec((H1, H2), lambda i: (0, 0)),
        pl.BlockSpec((1, H2), lambda i: (0, 0)),
        pl.BlockSpec((H1, H2), lambda i: (0, 0)),
        pl.BlockSpec((1, H2), lambda i: (0, 0)),
        pl.BlockSpec((2, H2), lambda i: (0, 0)),
        pl.BlockSpec((1, 2), lambda i: (0, 0)),
    ]
    out_spec = pl.BlockSpec((TB, 2), lambda i: (i, 0))

    def nbytes(a):
        return a.size * a.dtype.itemsize

    flops = 2 * B_pad * ((Ds + Da) * 2 * H1 + 2 * H1 * H2 + 2 * H2)
    bytes_accessed = (nbytes(state) + nbytes(action_flat)
                      + sum(nbytes(v) for v in packed.values())
                      + B_pad * 2 * 4)
    cost = pl.CostEstimate(flops=int(flops), transcendentals=0,
                           bytes_accessed=int(bytes_accessed))

    out = pl.pallas_call(
        _critic_kernel,
        out_shape=jax.ShapeDtypeStruct((B_pad, 2), jnp.float32),
        grid=grid,
        in_specs=in_specs,
        out_specs=out_spec,
        compiler_params=pltpu.CompilerParams(
            dimension_semantics=("parallel",),
            vmem_limit_bytes=48 * 1024 * 1024,
        ),
        cost_estimate=cost,
    )(state, action_flat,
      packed["w1s"], packed["w1a"], packed["b1f"],
      packed["w2"], packed["b2"],
      packed["w5"], packed["b5"],
      packed["wout"], packed["bout"])

    q1 = out[:B, 0:1]
    q2 = out[:B, 1:2]
    return q1, q2


# ---------------------------------------------------------------------------
# Parameter init (matches PyTorch nn.Linear default) and f32 reference
# ---------------------------------------------------------------------------
def init_critic_params(key, state_dim, action_seq_dim):
    """Deterministic init matching the PyTorch layer shapes.

    PyTorch nn.Linear default: U(-1/sqrt(fan_in), 1/sqrt(fan_in)).
    Weights stored as [in, out] for the kernel; biases as [1, out].
    """
    dims = [
        ("w1", "b1", state_dim + action_seq_dim, 400),
        ("w2", "b2", 400, 300),
        ("w3", "b3", 300, 1),
        ("w4", "b4", state_dim + action_seq_dim, 400),
        ("w5", "b5", 400, 300),
        ("w6", "b6", 300, 1),
    ]
    params = {}
    for (wname, bname, fan_in, fan_out) in dims:
        key, kw, kb = jax.random.split(key, 3)
        bound = 1.0 / jnp.sqrt(jnp.float32(fan_in))
        params[wname] = jax.random.uniform(
            kw, (fan_in, fan_out), jnp.float32, -bound, bound)
        params[bname] = jax.random.uniform(
            kb, (1, fan_out), jnp.float32, -bound, bound)
    return params


def critic_forward_ref(state, action_seq, params):
    """Pure-JAX f32 reference for correctness check."""
    B = state.shape[0]
    x = jnp.concatenate([state, action_seq.reshape(B, -1)], axis=1)
    h = jax.nn.relu(x @ params["w1"] + params["b1"])
    h = jax.nn.relu(h @ params["w2"] + params["b2"])
    q1 = h @ params["w3"] + params["b3"]
    g = jax.nn.relu(x @ params["w4"] + params["b4"])
    g = jax.nn.relu(g @ params["w5"] + params["b5"])
    q2 = g @ params["w6"] + params["b6"]
    return q1, q2


if __name__ == "__main__":
    key = jax.random.PRNGKey(0)

    # Small shapes consistent with the module:
    # state: [B, state_dim]; action_seq: [B, seq, act_dim] flattened to
    # [B, seq*act_dim] inside forward.
    B, state_dim, seq, act_dim = 2, 16, 8, 4
    action_seq_dim = seq * act_dim  # 32

    key, k_params, k_state, k_act = jax.random.split(key, 4)
    params = init_critic_params(k_params, state_dim, action_seq_dim)
    packed = pack_critic_params(params, state_dim)   # one-time pack/pad/cast
    packed = jax.tree_util.tree_map(jax.block_until_ready, packed)

    state = jax.random.normal(k_state, (B, state_dim), jnp.float32)
    action_seq = jax.random.normal(k_act, (B, seq, act_dim), jnp.float32)

    q1, q2 = critic_forward(state, action_seq, packed)
    q1 = jax.block_until_ready(q1)
    q2 = jax.block_until_ready(q2)

    q1_ref, q2_ref = critic_forward_ref(state, action_seq, params)
    assert q1.shape == (B, 1) and q2.shape == (B, 1)
    # bf16 matmul weights/activations with f32 accumulation -> ~1e-2 level
    # deviation vs the pure-f32 reference.
    assert jnp.allclose(q1, q1_ref, atol=3e-2, rtol=3e-2), (q1, q1_ref)
    assert jnp.allclose(q2, q2_ref, atol=3e-2, rtol=3e-2), (q2, q2_ref)

    print("KERNEL_OK")
</pallas_src>

<mosaic_0001>
module attributes {stable_mosaic.version = 11 : i64} {
  func.func @_critic_kernel(%arg0: i32, %arg1: memref<16x16xf32, #tpu.memory_space<vmem>>, %arg2: memref<16x32xf32, #tpu.memory_space<vmem>>, %arg3: memref<16x1024xbf16, #tpu.memory_space<vmem>>, %arg4: memref<32x1024xbf16, #tpu.memory_space<vmem>>, %arg5: memref<1x1024xf32, #tpu.memory_space<vmem>>, %arg6: memref<512x384xbf16, #tpu.memory_space<vmem>>, %arg7: memref<1x384xf32, #tpu.memory_space<vmem>>, %arg8: memref<512x384xbf16, #tpu.memory_space<vmem>>, %arg9: memref<1x384xf32, #tpu.memory_space<vmem>>, %arg10: memref<2x384xf32, #tpu.memory_space<vmem>>, %arg11: memref<1x2xf32, #tpu.memory_space<vmem>>, %arg12: memref<16x2xf32, #tpu.memory_space<vmem>>) attributes {dimension_semantics = [#tpu.dimension_semantics<parallel>], iteration_bounds = array<i64: 1>, scalar_prefetch = 0 : i64, scratch_operands = 0 : i64, tpu.core_type = #tpu.core_type<tc>, window_params = [{transform_indices = @transform_0, window_bounds = array<i64: 16, 16>}, {transform_indices = @transform_1, window_bounds = array<i64: 16, 32>}, {pipeline_mode = #tpu.pipeline_mode<synchronous>, transform_indices = @transform_2, window_bounds = array<i64: 16, 1024>}, {pipeline_mode = #tpu.pipeline_mode<synchronous>, transform_indices = @transform_3, window_bounds = array<i64: 32, 1024>}, {pipeline_mode = #tpu.pipeline_mode<synchronous>, transform_indices = @transform_4, window_bounds = array<i64: 1, 1024>}, {pipeline_mode = #tpu.pipeline_mode<synchronous>, transform_indices = @transform_5, window_bounds = array<i64: 512, 384>}, {pipeline_mode = #tpu.pipeline_mode<synchronous>, transform_indices = @transform_6, window_bounds = array<i64: 1, 384>}, {pipeline_mode = #tpu.pipeline_mode<synchronous>, transform_indices = @transform_7, window_bounds = array<i64: 512, 384>}, {pipeline_mode = #tpu.pipeline_mode<synchronous>, transform_indices = @transform_8, window_bounds = array<i64: 1, 384>}, {pipeline_mode = #tpu.pipeline_mode<synchronous>, transform_indices = @transform_9, window_bounds = array<i64: 2, 384>}, {pipeline_mode = #tpu.pipeline_mode<synchronous>, transform_indices = @transform_10, window_bounds = array<i64: 1, 2>}, {transform_indices = @transform_11, window_bounds = array<i64: 16, 2>}]} {
    %c0 = arith.constant 0 : index
    %c0_0 = arith.constant 0 : index
    %0 = vector.load %arg1[%c0, %c0_0] : memref<16x16xf32, #tpu.memory_space<vmem>>, vector<16x16xf32>
    %1 = arith.truncf %0 : vector<16x16xf32> to vector<16x16xbf16>
    %c0_1 = arith.constant 0 : index
    %c0_2 = arith.constant 0 : index
    %2 = vector.load %arg2[%c0_1, %c0_2] : memref<16x32xf32, #tpu.memory_space<vmem>>, vector<16x32xf32>
    %3 = arith.truncf %2 : vector<16x32xf32> to vector<16x32xbf16>
    %c0_3 = arith.constant 0 : index
    %c0_4 = arith.constant 0 : index
    %4 = vector.load %arg3[%c0_3, %c0_4] : memref<16x1024xbf16, #tpu.memory_space<vmem>>, vector<16x1024xbf16>
    %cst = arith.constant dense<0.000000e+00> : vector<16x1024xf32>
    %5 = tpu.matmul %1, %4, %cst {dimension_numbers = #tpu.dot_dimension_numbers<[1], [0], [0], [1], [0, 0, 1, 1], [], []>} : vector<16x16xbf16>, vector<16x1024xbf16>, vector<16x1024xf32> -> vector<16x1024xf32>
    %c0_5 = arith.constant 0 : index
    %c0_6 = arith.constant 0 : index
    %6 = vector.load %arg4[%c0_5, %c0_6] : memref<32x1024xbf16, #tpu.memory_space<vmem>>, vector<32x1024xbf16>
    %cst_7 = arith.constant dense<0.000000e+00> : vector<16x1024xf32>
    %7 = tpu.matmul %3, %6, %cst_7 {dimension_numbers = #tpu.dot_dimension_numbers<[1], [0], [0], [1], [0, 0, 1, 1], [], []>} : vector<16x32xbf16>, vector<32x1024xbf16>, vector<16x1024xf32> -> vector<16x1024xf32>
    %8 = arith.addf %5, %7 : vector<16x1024xf32>
    %c0_8 = arith.constant 0 : index
    %c0_9 = arith.constant 0 : index
    %9 = vector.load %arg5[%c0_8, %c0_9] : memref<1x1024xf32, #tpu.memory_space<vmem>>, vector<1x1024xf32>
    %10 = vector.broadcast %9 : vector<1x1024xf32> to vector<16x1024xf32>
    %11 = arith.addf %8, %10 : vector<16x1024xf32>
    %cst_10 = arith.constant 0.000000e+00 : f32
    %12 = vector.broadcast %cst_10 : f32 to vector<16x1024xf32>
    %13 = arith.maximumf %11, %12 : vector<16x1024xf32>
    %14 = vector.extract_strided_slice %13 {offsets = [0, 0], sizes = [16, 512], strides = [1, 1]} : vector<16x1024xf32> to vector<16x512xf32>
    %15 = arith.truncf %14 : vector<16x512xf32> to vector<16x512xbf16>
    %16 = vector.extract_strided_slice %13 {offsets = [0, 512], sizes = [16, 512], strides = [1, 1]} : vector<16x1024xf32> to vector<16x512xf32>
    %17 = arith.truncf %16 : vector<16x512xf32> to vector<16x512xbf16>
    %c0_11 = arith.constant 0 : index
    %c0_12 = arith.constant 0 : index
    %18 = vector.load %arg6[%c0_11, %c0_12] : memref<512x384xbf16, #tpu.memory_space<vmem>>, vector<512x384xbf16>
    %cst_13 = arith.constant dense<0.000000e+00> : vector<16x384xf32>
    %19 = tpu.matmul %15, %18, %cst_13 {dimension_numbers = #tpu.dot_dimension_numbers<[1], [0], [0], [1], [0, 0, 1, 1], [], []>} : vector<16x512xbf16>, vector<512x384xbf16>, vector<16x384xf32> -> vector<16x384xf32>
    %c0_14 = arith.constant 0 : index
    %c0_15 = arith.constant 0 : index
    %20 = vector.load %arg7[%c0_14, %c0_15] : memref<1x384xf32, #tpu.memory_space<vmem>>, vector<1x384xf32>
    %21 = vector.broadcast %20 : vector<1x384xf32> to vector<16x384xf32>
    %22 = arith.addf %19, %21 : vector<16x384xf32>
    %cst_16 = arith.constant 0.000000e+00 : f32
    %23 = vector.broadcast %cst_16 : f32 to vector<16x384xf32>
    %24 = arith.maximumf %22, %23 : vector<16x384xf32>
    %c0_17 = arith.constant 0 : index
    %c0_18 = arith.constant 0 : index
    %25 = vector.load %arg8[%c0_17, %c0_18] : memref<512x384xbf16, #tpu.memory_space<vmem>>, vector<512x384xbf16>
    %cst_19 = arith.constant dense<0.000000e+00> : vector<16x384xf32>
    %26 = tpu.matmul %17, %25, %cst_19 {dimension_numbers = #tpu.dot_dimension_numbers<[1], [0], [0], [1], [0, 0, 1, 1], [], []>} : vector<16x512xbf16>, vector<512x384xbf16>, vector<16x384xf32> -> vector<16x384xf32>
    %c0_20 = arith.constant 0 : index
    %c0_21 = arith.constant 0 : index
    %27 = vector.load %arg9[%c0_20, %c0_21] : memref<1x384xf32, #tpu.memory_space<vmem>>, vector<1x384xf32>
    %28 = vector.broadcast %27 : vector<1x384xf32> to vector<16x384xf32>
    %29 = arith.addf %26, %28 : vector<16x384xf32>
    %cst_22 = arith.constant 0.000000e+00 : f32
    %30 = vector.broadcast %cst_22 : f32 to vector<16x384xf32>
    %31 = arith.maximumf %29, %30 : vector<16x384xf32>
    %c0_23 = arith.constant 0 : index
    %c0_24 = arith.constant 0 : index
    %32 = vector.load %arg10[%c0_23, %c0_24] : memref<2x384xf32, #tpu.memory_space<vmem>>, vector<2x384xf32>
    %c0_25 = arith.constant 0 : index
    %c0_26 = arith.constant 0 : index
    %33 = vector.load %arg11[%c0_25, %c0_26] : memref<1x2xf32, #tpu.memory_space<vmem>>, vector<1x2xf32>
    %34 = vector.extract_strided_slice %32 {offsets = [0, 0], sizes = [1, 384], strides = [1, 1]} : vector<2x384xf32> to vector<1x384xf32>
    %35 = vector.broadcast %34 : vector<1x384xf32> to vector<16x384xf32>
    %36 = arith.mulf %24, %35 : vector<16x384xf32>
    %cst_27 = arith.constant dense<0.000000e+00> : vector<16xf32>
    %37 = vector.multi_reduction <add>, %36, %cst_27 [1] : vector<16x384xf32> to vector<16xf32>
    %38 = vector.shape_cast %37 : vector<16xf32> to vector<16x1xf32>
    %39 = vector.extract_strided_slice %32 {offsets = [1, 0], sizes = [1, 384], strides = [1, 1]} : vector<2x384xf32> to vector<1x384xf32>
    %40 = vector.broadcast %39 : vector<1x384xf32> to vector<16x384xf32>
    %41 = arith.mulf %31, %40 : vector<16x384xf32>
    %cst_28 = arith.constant dense<0.000000e+00> : vector<16xf32>
    %42 = vector.multi_reduction <add>, %41, %cst_28 [1] : vector<16x384xf32> to vector<16xf32>
    %43 = vector.shape_cast %42 : vector<16xf32> to vector<16x1xf32>
    %44 = vector.extract_strided_slice %33 {offsets = [0, 0], sizes = [1, 1], strides = [1, 1]} : vector<1x2xf32> to vector<1x1xf32>
    %45 = vector.broadcast %44 : vector<1x1xf32> to vector<16x1xf32>
    %46 = arith.addf %38, %45 : vector<16x1xf32>
    %c0_29 = arith.constant 0 : index
    %c0_30 = arith.constant 0 : index
    %47 = vector.load %arg12[%c0_29, %c0_30] : memref<16x2xf32, #tpu.memory_space<vmem>>, vector<16x1xf32>
    tpu.vector_store %arg12[%c0_29, %c0_30], %46 {strides = array<i32>} : memref<16x2xf32, #tpu.memory_space<vmem>>, vector<16x1xf32>,
    %48 = vector.extract_strided_slice %33 {offsets = [0, 1], sizes = [1, 1], strides = [1, 1]} : vector<1x2xf32> to vector<1x1xf32>
    %49 = vector.broadcast %48 : vector<1x1xf32> to vector<16x1xf32>
    %50 = arith.addf %43, %49 : vector<16x1xf32>
    %c0_31 = arith.constant 0 : index
    %c1 = arith.constant 1 : index
    %51 = vector.load %arg12[%c0_31, %c1] : memref<16x2xf32, #tpu.memory_space<vmem>>, vector<16x1xf32>
    tpu.vector_store %arg12[%c0_31, %c1], %50 {strides = array<i32>} : memref<16x2xf32, #tpu.memory_space<vmem>>, vector<16x1xf32>,
    return
  }
  func.func @transform_0(%arg0: i32) -> (i32, i32) {
    %c0_i32 = arith.constant 0 : i32
    %c0_i32_0 = arith.constant 0 : i32
    return %arg0, %c0_i32 : i32, i32
  }
  func.func @transform_1(%arg0: i32) -> (i32, i32) {
    %c0_i32 = arith.constant 0 : i32
    %c0_i32_0 = arith.constant 0 : i32
    return %arg0, %c0_i32 : i32, i32
  }
  func.func @transform_2(%arg0: i32) -> (i32, i32) {
    %c0_i32 = arith.constant 0 : i32
    %c0_i32_0 = arith.constant 0 : i32
    %c0_i32_1 = arith.constant 0 : i32
    return %c0_i32, %c0_i32_0 : i32, i32
  }
  func.func @transform_3(%arg0: i32) -> (i32, i32) {
    %c0_i32 = arith.constant 0 : i32
    %c0_i32_0 = arith.constant 0 : i32
    %c0_i32_1 = arith.constant 0 : i32
    return %c0_i32, %c0_i32_0 : i32, i32
  }
  func.func @transform_4(%arg0: i32) -> (i32, i32) {
    %c0_i32 = arith.constant 0 : i32
    %c0_i32_0 = arith.constant 0 : i32
    %c0_i32_1 = arith.constant 0 : i32
    return %c0_i32, %c0_i32_0 : i32, i32
  }
  func.func @transform_5(%arg0: i32) -> (i32, i32) {
    %c0_i32 = arith.constant 0 : i32
    %c0_i32_0 = arith.constant 0 : i32
    %c0_i32_1 = arith.constant 0 : i32
    return %c0_i32, %c0_i32_0 : i32, i32
  }
  func.func @transform_6(%arg0: i32) -> (i32, i32) {
    %c0_i32 = arith.constant 0 : i32
    %c0_i32_0 = arith.constant 0 : i32
    %c0_i32_1 = arith.constant 0 : i32
    return %c0_i32, %c0_i32_0 : i32, i32
  }
  func.func @transform_7(%arg0: i32) -> (i32, i32) {
    %c0_i32 = arith.constant 0 : i32
    %c0_i32_0 = arith.constant 0 : i32
    %c0_i32_1 = arith.constant 0 : i32
    return %c0_i32, %c0_i32_0 : i32, i32
  }
  func.func @transform_8(%arg0: i32) -> (i32, i32) {
    %c0_i32 = arith.constant 0 : i32
    %c0_i32_0 = arith.constant 0 : i32
    %c0_i32_1 = arith.constant 0 : i32
    return %c0_i32, %c0_i32_0 : i32, i32
  }
  func.func @transform_9(%arg0: i32) -> (i32, i32) {
    %c0_i32 = arith.constant 0 : i32
    %c0_i32_0 = arith.constant 0 : i32
    %c0_i32_1 = arith.constant 0 : i32
    return %c0_i32, %c0_i32_0 : i32, i32
  }
  func.func @transform_10(%arg0: i32) -> (i32, i32) {
    %c0_i32 = arith.constant 0 : i32
    %c0_i32_0 = arith.constant 0 : i32
    %c0_i32_1 = arith.constant 0 : i32
    return %c0_i32, %c0_i32_0 : i32, i32
  }
  func.func @transform_11(%arg0: i32) -> (i32, i32) {
    %c0_i32 = arith.constant 0 : i32
    %c0_i32_0 = arith.constant 0 : i32
    return %arg0, %c0_i32 : i32, i32
  }
}

</mosaic_0001>

<bundles_post_ra>
// kernel: critic_forward.1
= control target key start
LH: loop header
LB: loop body
LE: loop exit
PB: predicated region body
PF: predicated region fallthrough
CT: control target
= control target key end

     0   :  { %16 = vsyncpa [#allocation3], 0  ;;  %s3735_s0 = inlined_call_operand.vmem [shape: f32[16,16], index: 0, kind: input, shape index: {}]   ;;  %s3736_s1 = inlined_call_operand.vmem [shape: f32[16,32], index: 1, kind: input, shape index: {}]   ;;  %s3737_s2 = inlined_call_operand.vmem [shape: bf16[16,1024], index: 2, kind: input, shape index: {}]   ;;  %s3738_s3 = inlined_call_operand.hbm [shape: bf16[32,1024], index: 3, kind: input, shape index: {}]   ;;  %s3739_s4 = inlined_call_operand.vmem [shape: f32[1,1024], index: 4, kind: input, shape index: {}]   ;;  %s3740_s5 = inlined_call_operand.hbm [shape: bf16[512,384], index: 5, kind: input, shape index: {}]   ;;  %s3741_s6 = inlined_call_operand.vmem [shape: f32[1,384], index: 6, kind: input, shape index: {}]   ;;  %s3742_s7 = inlined_call_operand.hbm [shape: bf16[512,384], index: 7, kind: input, shape index: {}]   ;;  %s3743_s8 = inlined_call_operand.vmem [shape: f32[1,384], index: 8, kind: input, shape index: {}]   ;;  %s3744_s9 = inlined_call_operand.vmem [shape: f32[2,384], index: 9, kind: input, shape index: {}]   ;;  %s3745_s10 = inlined_call_operand.vmem [shape: f32[1,2], index: 10, kind: input, shape index: {}]   ;;  %s3746_s11 = inlined_call_operand.vmem [shape: f32[16,2], index: 11, kind: output, shape index: {}]  }
   0x1   :  { %17 = vsyncpa [#allocation5], 0  ;;  %s43_s19 = sshll.u32 %s3740_s5, 4  ;;  %s3418_s20 = smov [#allocation4]   ;;  %s44_s19 = int_to_ptr.hbm [resolvable:$true] %s43_s19 }
   0x2   :  { %s45_s21 = sshll.u32 %s3418_s20, 4  ;;  %s28_s24 = sshll.u32 %s3738_s3, 4  ;;  %s46_s21 = int_to_ptr.vmem [resolvable:$true] %s45_s21  ;;  %s29_s24 = int_to_ptr.hbm [resolvable:$true] %s28_s24 }
   0x3   :  { %s3419_s25 = smov 192   ;;  %s3420_s26 = smov 12  }
   0x4   :  { %51 = dma.hbm_to_vmem [thread:$0]  %s44_s19, 12288, %s46_s21, [#allocation5], %s3419_s25, %s3419_s25, %s3420_s26  }
   0x5   :  { %s3421_s27 = smov [#allocation2]   ;;  %s3422_s29 = smov 512  }
   0x6   :  { %s30_s28 = sshll.u32 %s3421_s27, 4  ;;  %s3423_s30 = smov 32   ;;  %s31_s28 = int_to_ptr.vmem [resolvable:$true] %s30_s28 }
   0x7   :  { %36 = dma.hbm_to_vmem [thread:$0]  %s29_s24, 2048, %s31_s28, [#allocation3], %s3422_s29, %s3422_s29, %s3423_s30  }
   0x8   :  { %s58_s13 = sshll.u32 %s3742_s7, 4  ;;  %s3424_s14 = smov [#allocation6]   ;;  %s59_s13 = int_to_ptr.hbm [resolvable:$true] %s58_s13 }
   0x9   :  { %s60_s15 = sshll.u32 %s3424_s14, 4  ;;  %s61_s15 = int_to_ptr.vmem [resolvable:$true] %s60_s15 }
   0xa   :  { %66 = dma.hbm_to_vmem [thread:$0]  %s59_s13, 12288, %s61_s15, [#allocation5], %s3419_s25, %s3419_s25, %s3420_s26  }
   0xb   :  { %3414 = dma.done.wait [#allocation3], 2048  }
   0xc   :  { %3415 = vsyncadd [#allocation3], 4294965248 }
   0xd   :  { %3416 = dma.done.wait [#allocation5], 24576  }
   0xe   :  { %3417 = vsyncadd [#allocation5], 4294942720  ;;  %v2272_v0 = vld [vmem:[#allocation2 + $0x40] sm:$0xf]  ;;  %v3134_v2 = vld [vmem:[#allocation2 + $0x44] sm:$0xf] }
   0xf   :  { %v3138_v1 = vld [vmem:[#allocation2 + $0x5c] sm:$0xf0]  ;;  %v2274_v4 = vld [vmem:[#allocation2 + $0x60] sm:$0xf0]  ;;  %v2280_v5 = vld [vmem:[#allocation2 + $0x48] sm:$0xf] }
  0x10   :  { %v2273_v3 = vor.u32 %v3138_v1, %v2272_v0  ;;  %v3139_v6 = vld [vmem:[#allocation2 + $0x64] sm:$0xf0]  ;;  %v2277_v7 = vor.u32 %v3134_v2, %v2274_v4  ;;  %v3135_v9 = vld [vmem:[#allocation2 + $0x4c] sm:$0xf]  ;;  %v2240_v11 = vld [vmem:[#allocation2] sm:$0xf] }
  0x11   :  { %v2281_v8 = vor.u32 %v3139_v6, %v2280_v5  ;;  %v2282_v10 = vld [vmem:[#allocation2 + $0x68] sm:$0xf0]  ;;  %v3130_v13 = vld [vmem:[#allocation2 + $0x1c] sm:$0xf0]  ;;  %v3126_v14 = vld [vmem:[#allocation2 + $0x4] sm:$0xf] }
  0x12   :  { %206 = vmatpush.bf16.msra.mxu0 %v2273_v3  ;;  %v2285_v12 = vor.u32 %v3135_v9, %v2282_v10  ;;  %v2242_v15 = vld [vmem:[#allocation2 + $0x20] sm:$0xf0]  ;;  %220 = vmatpush.bf16.msra.mxu1 %v2277_v7  ;;  %v2241_v16 = vor.u32 %v3130_v13, %v2240_v11  ;;  %v2248_v18 = vld [vmem:[#allocation2 + $0x8] sm:$0xf]  ;;  %v3127_v20 = vld [vmem:[#allocation2 + $0xc] sm:$0xf] }
  0x13   :  { %234 = vmatpush.bf16.msra.mxu2 %v2281_v8  ;;  %v2245_v17 = vor.u32 %v3126_v14, %v2242_v15  ;;  %v3131_v19 = vld [vmem:[#allocation2 + $0x24] sm:$0xf0]  ;;  %v2250_v22 = vld [vmem:[#allocation2 + $0x28] sm:$0xf0]  ;;  %v89_v23 = vld [vmem:[%s3736_s1] sm:$0xff]  ;;  %vm196_vm0 = vcmask 261120  }
  0x14   :  { %248 = vmatpush.bf16.msra.mxu3 %v2285_v12  ;;  %v2249_v21 = vor.u32 %v3131_v19, %v2248_v18  ;;  %v90_v24 = vld [vmem:[%s3736_s1 + $0x8] sm:$0xff]  ;;  %v2253_v25 = vor.u32 %v3127_v20, %v2250_v22  ;;  %v2288_v27 = vld [vmem:[#allocation2 + $0x50] sm:$0xf]  ;;  %v3136_v29 = vld [vmem:[#allocation2 + $0x54] sm:$0xf]  ;;  %vm352_vm1 = vcmask 130048  }
  0x15   :  { %v3500_v26 = vpack.c.bf16 %v90_v24, %v89_v23  ;;  %v3140_v28 = vld [vmem:[#allocation2 + $0x6c] sm:$0xf0]  ;;  %v2290_v31 = vld [vmem:[#allocation2 + $0x70] sm:$0xf0]  ;;  %v2296_v32 = vld [vmem:[#allocation2 + $0x58] sm:$0xf] }
  0x16   :  { %207 = vmatpush.bf16.msra.mxu0 %v2241_v16  ;;  %v2289_v30 = vor.u32 %v3140_v28, %v2288_v27  ;;  %v3141_v33 = vld [vmem:[#allocation2 + $0x74] sm:$0xf0]  ;;  %221 = vmatpush.bf16.msra.mxu1 %v2245_v17  ;;  %v2293_v34 = vor.u32 %v3136_v29, %v2290_v31  ;;  %v3137_v36 = vld [vmem:[#allocation2 + $0x5c] sm:$0xf]  ;;  %v2256_v38 = vld [vmem:[#allocation2 + $0x10] sm:$0xf] }
  0x17   :  { %235 = vmatpush.bf16.msra.mxu2 %v2249_v21  ;;  %v2297_v35 = vor.u32 %v3141_v33, %v2296_v32  ;;  %v2298_v37 = vld [vmem:[#allocation2 + $0x78] sm:$0xf0]  ;;  %v3132_v40 = vld [vmem:[#allocation2 + $0x2c] sm:$0xf0]  ;;  %v3128_v41 = vld [vmem:[#allocation2 + $0x14] sm:$0xf] }
  0x18   :  { %249 = vmatpush.bf16.msra.mxu3 %v2253_v25  ;;  %v2301_v39 = vor.u32 %v3137_v36, %v2298_v37  ;;  %v2258_v42 = vld [vmem:[#allocation2 + $0x30] sm:$0xf0]  ;;  %v2257_v43 = vor.u32 %v3132_v40, %v2256_v38  ;;  %v2264_v45 = vld [vmem:[#allocation2 + $0x18] sm:$0xf]  ;;  %v3129_v47 = vld [vmem:[#allocation2 + $0x1c] sm:$0xf] }
  0x19   :  { %2302 = vmatmul.msk.bf16.vlgmr.msra.gmra.mxu0 %vm196_vm0, %v3500_v26  ;;  %v2261_v44 = vor.u32 %v3128_v41, %v2258_v42  ;;  %v3133_v46 = vld [vmem:[#allocation2 + $0x34] sm:$0xf0]  ;;  %2303 = vmatmul.msk.bf16.vlgmr.msra.gmra.mxu1 %vm196_vm0, %v3500_v26  ;;  %v2266_v48 = vld [vmem:[#allocation2 + $0x38] sm:$0xf0]  ;;  %v2312_v49 = vld [vmem:[%s3737_s2] sm:$0xf] }
  0x1a   :  { %262 = vmatpush.bf16.msrb.mxu0 %v2289_v30  ;;  %276 = vmatpush.bf16.msrb.mxu1 %v2293_v34  ;;  %v3122_v50 = vld [vmem:[%s3737_s2 + $0x1c] sm:$0xf0]  ;;  %v2265_v51 = vor.u32 %v3133_v46, %v2264_v45  ;;  %v3118_v53 = vld [vmem:[%s3737_s2 + $0x4] sm:$0xf]  ;;  %v2320_v55 = vld [vmem:[%s3737_s2 + $0x8] sm:$0xf]  ;;  %v2269_v56 = vor.u32 %v3129_v47, %v2266_v48 }
  0x1b   :  { %2304 = vmatmul.msk.bf16.vlgmr.msra.gmra.mxu2 %vm196_vm0, %v3500_v26  ;;  %2305 = vmatmul.msk.bf16.vlgmr.msra.gmra.mxu3 %vm196_vm0, %v3500_v26  ;;  %v2313_v52 = vor.u32 %v3122_v50, %v2312_v49  ;;  %v2314_v54 = vld [vmem:[%s3737_s2 + $0x20] sm:$0xf0]  ;;  %v3123_v58 = vld [vmem:[%s3737_s2 + $0x24] sm:$0xf0]  ;;  %v3119_v59 = vld [vmem:[%s3737_s2 + $0xc] sm:$0xf] }
  0x1c   :  { %290 = vmatpush.bf16.msrb.mxu2 %v2297_v35  ;;  %304 = vmatpush.bf16.msrb.mxu3 %v2301_v39  ;;  %v2317_v57 = vor.u32 %v3118_v53, %v2314_v54  ;;  %v2322_v60 = vld [vmem:[%s3737_s2 + $0x28] sm:$0xf0]  ;;  %v2321_v61 = vor.u32 %v3123_v58, %v2320_v55  ;;  %v2328_v63 = vld [vmem:[%s3737_s2 + $0x10] sm:$0xf]  ;;  %v3120_v1 = vld [vmem:[%s3737_s2 + $0x14] sm:$0xf] }
  0x1d   :  { %v2325_v62 = vor.u32 %v3119_v59, %v2322_v60  ;;  %v3124_v0 = vld [vmem:[%s3737_s2 + $0x2c] sm:$0xf0]  ;;  %v2330_v2 = vld [vmem:[%s3737_s2 + $0x30] sm:$0xf0]  ;;  %v2336_v3 = vld [vmem:[%s3737_s2 + $0x18] sm:$0xf] }
  0x1e   :  { %263 = vmatpush.bf16.msrb.mxu0 %v2257_v43  ;;  %277 = vmatpush.bf16.msrb.mxu1 %v2261_v44  ;;  %v3125_v4 = vld [vmem:[%s3737_s2 + $0x34] sm:$0xf0]  ;;  %v3121_v5 = vld [vmem:[%s3737_s2 + $0x1c] sm:$0xf]  ;;  %v2329_v7 = vor.u32 %v3124_v0, %v2328_v63  ;;  %v2333_v8 = vor.u32 %v3120_v1, %v2330_v2  ;;  %v86_v11 = vld [vmem:[%s3735_s0] sm:$0xff]  ;;  %vm2224_vm2 = vcmask 7168  }
  0x1f   :  { %v2338_v6 = vld [vmem:[%s3737_s2 + $0x38] sm:$0xf0]  ;;  %v2337_v9 = vor.u32 %v3125_v4, %v2336_v3  ;;  %v87_v12 = vld [vmem:[%s3735_s0 + $0x8] sm:$0xff]  ;;  %v3164_v14 = vld [vmem:[#allocation4 + $0xb0] sm:$0xf0]  ;;  %vm2229_vm3 = vcmask 15368  }
  0x20   :  { %291 = vmatpush.bf16.msrb.mxu2 %v2265_v51  ;;  %305 = vmatpush.bf16.msrb.mxu3 %v2269_v56  ;;  %v2341_v10 = vor.u32 %v3121_v5, %v2338_v6  ;;  %v2436_v13 = vld [vmem:[#allocation4 + $0xa8] sm:$0xf]  ;;  %v88_v16 = vpack.c.bf16 %v87_v12, %v86_v11  ;;  %v3188_v17 = vld [vmem:[#allocation4 + $0x170] sm:$0xf0]  ;;  %v2424_v24 = vld [vmem:[#allocation4 + $0x90] sm:$0xf] }
  0x21   :  { %v2532_v15 = vld [vmem:[#allocation4 + $0x168] sm:$0xf]  ;;  %v3212_v19 = vld [vmem:[#allocation4 + $0x230] sm:$0xf0]  ;;  %v2437_v22 = vor.u32 %v3164_v14, %v2436_v13  ;;  %v3161_v25 = vld [vmem:[#allocation4 + $0x98] sm:$0xf0] }
  0x22   :  { %363 = vmatpush.bf16.msra.mxu0 %v2313_v52  ;;  %377 = vmatpush.bf16.msra.mxu1 %v2317_v57  ;;  %v2628_v18 = vld [vmem:[#allocation4 + $0x228] sm:$0xf]  ;;  %v3236_v21 = vld [vmem:[#allocation4 + $0x2f0] sm:$0xf0]  ;;  %v2533_v23 = vor.u32 %v3188_v17, %v2532_v15  ;;  %v2520_v27 = vld [vmem:[#allocation4 + $0x150] sm:$0xf]  ;;  %v2425_v30 = vor.u32 %v3161_v25, %v2424_v24 }
  0x23   :  { %v2724_v20 = vld [vmem:[#allocation4 + $0x2e8] sm:$0xf]  ;;  %v3185_v28 = vld [vmem:[#allocation4 + $0x158] sm:$0xf0]  ;;  %v2412_v32 = vld [vmem:[#allocation4 + $0x78] sm:$0xf] }
  0x24   :  { %391 = vmatpush.bf16.msra.mxu2 %v2321_v61  ;;  %405 = vmatpush.bf16.msra.mxu3 %v2325_v62  ;;  %v2725_v29 = vor.u32 %v3236_v21, %v2724_v20  ;;  %v2521_v31 = vor.u32 %v3185_v28, %v2520_v27  ;;  %v3158_v33 = vld [vmem:[#allocation4 + $0x80] sm:$0xf0]  ;;  %v2508_v34 = vld [vmem:[#allocation4 + $0x138] sm:$0xf]  ;;  %v2616_v38 = vld [vmem:[#allocation4 + $0x210] sm:$0xf] }
  0x25   :  { %v3182_v35 = vld [vmem:[#allocation4 + $0x140] sm:$0xf0]  ;;  %v2413_v36 = vor.u32 %v3158_v33, %v2412_v32  ;;  %v3209_v39 = vld [vmem:[#allocation4 + $0x218] sm:$0xf0]  ;;  %v2712_v40 = vld [vmem:[#allocation4 + $0x2d0] sm:$0xf] }
  0x26   :  { %v2509_v37 = vor.u32 %v3182_v35, %v2508_v34  ;;  %v2617_v41 = vor.u32 %v3209_v39, %v2616_v38  ;;  %v3233_v42 = vld [vmem:[#allocation4 + $0x2d8] sm:$0xf0]  ;;  %v2400_v43 = vld [vmem:[#allocation4 + $0x60] sm:$0xf]  ;;  %v3155_v44 = vld [vmem:[#allocation4 + $0x68] sm:$0xf0] }
  0x27   :  { %v2713_v45 = vor.u32 %v3233_v42, %v2712_v40  ;;  %v2401_v46 = vor.u32 %v3155_v44, %v2400_v43  ;;  %v2496_v47 = vld [vmem:[#allocation4 + $0x120] sm:$0xf]  ;;  %v3179_v48 = vld [vmem:[#allocation4 + $0x128] sm:$0xf0]  ;;  %v2604_v49 = vld [vmem:[#allocation4 + $0x1f8] sm:$0xf] }
  0x28   :  { %v2497_v50 = vor.u32 %v3179_v48, %v2496_v47  ;;  %v3206_v51 = vld [vmem:[#allocation4 + $0x200] sm:$0xf0]  ;;  %v2700_v52 = vld [vmem:[#allocation4 + $0x2b8] sm:$0xf]  ;;  %v2388_v56 = vld [vmem:[#allocation4 + $0x48] sm:$0xf] }
  0x29   :  { %2306 = vmatmul.msk.bf16.vlgmr.msrb.gmra.mxu0 %vm196_vm0, %v3500_v26  ;;  %2307 = vmatmul.msk.bf16.vlgmr.msrb.gmra.mxu1 %vm196_vm0, %v3500_v26  ;;  %v3230_v53 = vld [vmem:[#allocation4 + $0x2c0] sm:$0xf0]  ;;  %v2605_v54 = vor.u32 %v3206_v51, %v2604_v49  ;;  %v3152_v57 = vld [vmem:[#allocation4 + $0x50] sm:$0xf0]  ;;  %v2484_v58 = vld [vmem:[#allocation4 + $0x108] sm:$0xf] }
  0x2a   :  { %419 = vmatpush.bf16.msrb.mxu0 %v2329_v7  ;;  %433 = vmatpush.bf16.msrb.mxu1 %v2333_v8  ;;  %v2701_v55 = vor.u32 %v3230_v53, %v2700_v52  ;;  %v2389_v59 = vor.u32 %v3152_v57, %v2388_v56  ;;  %v3176_v60 = vld [vmem:[#allocation4 + $0x110] sm:$0xf0]  ;;  %v2592_v62 = vld [vmem:[#allocation4 + $0x1e0] sm:$0xf]  ;;  %v3203_v63 = vld [vmem:[#allocation4 + $0x1e8] sm:$0xf0] }
  0x2b   :  { %2308 = vmatmul.msk.bf16.vlgmr.msrb.gmra.mxu2 %vm196_vm0, %v3500_v26  ;;  %2309 = vmatmul.msk.bf16.vlgmr.msrb.gmra.mxu3 %vm196_vm0, %v3500_v26  ;;  %v2629_v26 = vor.u32 %v3212_v19, %v2628_v18  ;;  %v2485_v61 = vor.u32 %v3176_v60, %v2484_v58  ;;  %v2688_v0 = vld [vmem:[#allocation4 + $0x2a0] sm:$0xf]  ;;  %v2593_v1 = vor.u32 %v3203_v63, %v2592_v62  ;;  %v3227_v2 = vld [vmem:[#allocation4 + $0x2a8] sm:$0xf0]  ;;  %v2376_v3 = vld [vmem:[#allocation4 + $0x30] sm:$0xf] }
  0x2c   :  { %447 = vmatpush.bf16.msrb.mxu2 %v2337_v9  ;;  %461 = vmatpush.bf16.msrb.mxu3 %v2341_v10  ;;  %v3149_v4 = vld [vmem:[#allocation4 + $0x38] sm:$0xf0]  ;;  %v2689_v5 = vor.u32 %v3227_v2, %v2688_v0  ;;  %v2472_v7 = vld [vmem:[#allocation4 + $0xf0] sm:$0xf]  ;;  %v2580_v9 = vld [vmem:[#allocation4 + $0x1c8] sm:$0xf] }
  0x2d   :  { %v2377_v6 = vor.u32 %v3149_v4, %v2376_v3  ;;  %v3173_v8 = vld [vmem:[#allocation4 + $0xf8] sm:$0xf0]  ;;  %v3200_v11 = vld [vmem:[#allocation4 + $0x1d0] sm:$0xf0]  ;;  %v2676_v12 = vld [vmem:[#allocation4 + $0x288] sm:$0xf] }
  0x2e   :  { %v2473_v10 = vor.u32 %v3173_v8, %v2472_v7  ;;  %v3224_v13 = vld [vmem:[#allocation4 + $0x290] sm:$0xf0]  ;;  %v2581_v14 = vor.u32 %v3200_v11, %v2580_v9  ;;  %v3146_v17 = vld [vmem:[#allocation4 + $0x20] sm:$0xf0]  ;;  %v2460_v18 = vld [vmem:[#allocation4 + $0xd8] sm:$0xf] }
  0x2f   :  { %v2677_v15 = vor.u32 %v3224_v13, %v2676_v12  ;;  %v3170_v20 = vld [vmem:[#allocation4 + $0xe0] sm:$0xf0]  ;;  %v2664_v24 = vld [vmem:[#allocation4 + $0x270] sm:$0xf]  ;;  %v2352_v27 = vld [vmem:[#allocation4] sm:$0xf] }
  0x30   :  { %v2461_v21 = vor.u32 %v3170_v20, %v2460_v18  ;;  %v3143_v28 = vld [vmem:[#allocation4 + $0x8] sm:$0xf0]  ;;  %v2438_v35 = vld [vmem:[#allocation4 + $0xb4] sm:$0xf0]  ;;  %v3218_v44 = vld [vmem:[#allocation4 + $0x260] sm:$0xf0] }
  0x31   :  { %v3167_v32 = vld [vmem:[#allocation4 + $0xc8] sm:$0xf0]  ;;  %v2556_v40 = vld [vmem:[#allocation4 + $0x198] sm:$0xf]  ;;  %v2426_v47 = vld [vmem:[#allocation4 + $0x9c] sm:$0xf0] }
  0x32   :  { %v3163_v33 = vld [vmem:[#allocation4 + $0xac] sm:$0xf]  ;;  %v2652_v42 = vld [vmem:[#allocation4 + $0x258] sm:$0xf]  ;;  %v3184_v48 = vld [vmem:[#allocation4 + $0x154] sm:$0xf] }
  0x33   :  { %v2441_v38 = vor.u32 %v3163_v33, %v2438_v35  ;;  %v2544_v51 = vld [vmem:[#allocation4 + $0x180] sm:$0xf]  ;;  %v3191_v52 = vld [vmem:[#allocation4 + $0x188] sm:$0xf0]  ;;  %v3157_v0 = vld [vmem:[#allocation4 + $0x7c] sm:$0xf] }
  0x34   :  { %v3215_v56 = vld [vmem:[#allocation4 + $0x248] sm:$0xf0]  ;;  %v3181_v2 = vld [vmem:[#allocation4 + $0x13c] sm:$0xf]  ;;  %v2510_v4 = vld [vmem:[#allocation4 + $0x144] sm:$0xf0] }
  0x35   :  { %v3211_v57 = vld [vmem:[#allocation4 + $0x22c] sm:$0xf]  ;;  %v2618_v7 = vld [vmem:[#allocation4 + $0x21c] sm:$0xf0]  ;;  %v3232_v8 = vld [vmem:[#allocation4 + $0x2d4] sm:$0xf] }
  0x36   :  { %v3235_v60 = vld [vmem:[#allocation4 + $0x2ec] sm:$0xf]  ;;  %v3154_v12 = vld [vmem:[#allocation4 + $0x64] sm:$0xf]  ;;  %v2402_v13 = vld [vmem:[#allocation4 + $0x6c] sm:$0xf0] }
  0x37   :  { %v3205_v20 = vld [vmem:[#allocation4 + $0x1fc] sm:$0xf]  ;;  %v2594_v33 = vld [vmem:[#allocation4 + $0x1ec] sm:$0xf0] }
  0x39   :  { %2342 = vmatmul.msk.bf16.vlgmr.msra.gmra.mxu0 %vm352_vm1, %v88_v16  ;;  %2343 = vmatmul.msk.bf16.vlgmr.msra.gmra.mxu1 %vm352_vm1, %v88_v16 }
  0x3a   :  { %1174 = vmatpush.bf16.msra.mxu0 %v2437_v22  ;;  %1188 = vmatpush.bf16.msra.mxu1 %v2533_v23  ;;  %v2568_v22 = vld [vmem:[#allocation4 + $0x1b0] sm:$0xf]  ;;  %v3197_v23 = vld [vmem:[#allocation4 + $0x1b8] sm:$0xf0] }
  0x3b   :  { %2344 = vmatmul.msk.bf16.vlgmr.msra.gmra.mxu2 %vm352_vm1, %v88_v16  ;;  %2345 = vmatmul.msk.bf16.vlgmr.msra.gmra.mxu3 %vm352_vm1, %v88_v16  ;;  %v2569_v25 = vor.u32 %v3197_v23, %v2568_v22  ;;  %v3229_v23 = vld [vmem:[#allocation4 + $0x2bc] sm:$0xf] }
  0x3c   :  { %1202 = vmatpush.bf16.msra.mxu2 %v2629_v26  ;;  %1216 = vmatpush.bf16.msra.mxu3 %v2725_v29  ;;  %v3221_v26 = vld [vmem:[#allocation4 + $0x278] sm:$0xf0] }
  0x3d   :  { %v2665_v29 = vor.u32 %v3221_v26, %v2664_v24  ;;  %v2702_v24 = vld [vmem:[#allocation4 + $0x2c4] sm:$0xf0]  ;;  %v3151_v26 = vld [vmem:[#allocation4 + $0x4c] sm:$0xf] }
  0x3e   :  { %1175 = vmatpush.bf16.msra.mxu0 %v2425_v30  ;;  %1189 = vmatpush.bf16.msra.mxu1 %v2521_v31  ;;  %v2353_v30 = vor.u32 %v3143_v28, %v2352_v27  ;;  %v2448_v31 = vld [vmem:[#allocation4 + $0xc0] sm:$0xf]  ;;  %v2390_v27 = vld [vmem:[#allocation4 + $0x54] sm:$0xf0] }
  0x3f   :  { %v2449_v34 = vor.u32 %v3167_v32, %v2448_v31  ;;  %v2393_v28 = vor.u32 %v3151_v26, %v2390_v27  ;;  %v3202_v32 = vld [vmem:[#allocation4 + $0x1e4] sm:$0xf] }
  0x40   :  { %1203 = vmatpush.bf16.msra.mxu2 %v2617_v41  ;;  %1217 = vmatpush.bf16.msra.mxu3 %v2713_v45  ;;  %v3194_v41 = vld [vmem:[#allocation4 + $0x1a0] sm:$0xf0]  ;;  %v2653_v45 = vor.u32 %v3218_v44, %v2652_v42  ;;  %v2597_v35 = vor.u32 %v3202_v32, %v2594_v33 }
  0x41   :  { %v2557_v43 = vor.u32 %v3194_v41, %v2556_v40  ;;  %v2378_v40 = vld [vmem:[#allocation4 + $0x3c] sm:$0xf0]  ;;  %v3172_v41 = vld [vmem:[#allocation4 + $0xf4] sm:$0xf] }
  0x42   :  { %1176 = vmatpush.bf16.msra.mxu0 %v2413_v36  ;;  %1190 = vmatpush.bf16.msra.mxu1 %v2509_v37  ;;  %v3187_v36 = vld [vmem:[#allocation4 + $0x16c] sm:$0xf]  ;;  %v2534_v37 = vld [vmem:[#allocation4 + $0x174] sm:$0xf0] }
  0x43   :  { %v2537_v39 = vor.u32 %v3187_v36, %v2534_v37  ;;  %v2690_v36 = vld [vmem:[#allocation4 + $0x2ac] sm:$0xf0] }
  0x44   :  { %1204 = vmatpush.bf16.msra.mxu2 %v2605_v54  ;;  %1218 = vmatpush.bf16.msra.mxu3 %v2701_v55  ;;  %v2545_v54 = vor.u32 %v3191_v52, %v2544_v51  ;;  %v2640_v55 = vld [vmem:[#allocation4 + $0x240] sm:$0xf]  ;;  %v3223_v51 = vld [vmem:[#allocation4 + $0x28c] sm:$0xf]  ;;  %v2678_v52 = vld [vmem:[#allocation4 + $0x294] sm:$0xf0] }
  0x45   :  { %v2641_v58 = vor.u32 %v3215_v56, %v2640_v55  ;;  %v2366_v55 = vld [vmem:[#allocation4 + $0x24] sm:$0xf0]  ;;  %v3169_v56 = vld [vmem:[#allocation4 + $0xdc] sm:$0xf] }
  0x46   :  { %1177 = vmatpush.bf16.msra.mxu0 %v2401_v46  ;;  %1191 = vmatpush.bf16.msra.mxu1 %v2497_v50  ;;  %v3160_v46 = vld [vmem:[#allocation4 + $0x94] sm:$0xf]  ;;  %v2522_v50 = vld [vmem:[#allocation4 + $0x15c] sm:$0xf0] }
  0x47   :  { %v2429_v49 = vor.u32 %v3160_v46, %v2426_v47  ;;  %v2525_v53 = vor.u32 %v3184_v48, %v2522_v50  ;;  %v3199_v48 = vld [vmem:[#allocation4 + $0x1cc] sm:$0xf] }
  0x48   :  { %1205 = vmatpush.bf16.msra.mxu2 %v2593_v1  ;;  %1219 = vmatpush.bf16.msra.mxu3 %v2689_v5  ;;  %v2414_v1 = vld [vmem:[#allocation4 + $0x84] sm:$0xf0]  ;;  %v2513_v5 = vor.u32 %v3181_v2, %v2510_v4  ;;  %v2354_v4 = vld [vmem:[#allocation4 + $0xc] sm:$0xf0] }
  0x49   :  { %2346 = vmatmul.msk.bf16.vlgmr.msrb.gmra.mxu0 %vm352_vm1, %v88_v16  ;;  %2347 = vmatmul.msk.bf16.vlgmr.msrb.gmra.mxu1 %vm352_vm1, %v88_v16  ;;  %v2417_v3 = vor.u32 %v3157_v0, %v2414_v1  ;;  %v2666_v0 = vld [vmem:[#allocation4 + $0x27c] sm:$0xf0] }
  0x4a   :  { %1178 = vmatpush.bf16.msra.mxu0 %v2389_v59  ;;  %1192 = vmatpush.bf16.msra.mxu1 %v2485_v61  ;;  %v2630_v59 = vld [vmem:[#allocation4 + $0x234] sm:$0xf0] }
  0x4b   :  { %2348 = vmatmul.msk.bf16.vlgmr.msrb.gmra.mxu2 %vm352_vm1, %v88_v16  ;;  %2349 = vmatmul.msk.bf16.vlgmr.msrb.gmra.mxu3 %vm352_vm1, %v88_v16  ;;  %v2364_v16 = vld [vmem:[#allocation4 + $0x18] sm:$0xf]  ;;  %v2633_v62 = vor.u32 %v3211_v57, %v2630_v59 }
  0x4c   :  { %1206 = vmatpush.bf16.msra.mxu2 %v2581_v14  ;;  %v2365_v19 = vor.u32 %v3146_v17, %v2364_v16  ;;  %1220 = vmatpush.bf16.msra.mxu3 %v2677_v15  ;;  %v2726_v61 = vld [vmem:[#allocation4 + $0x2f4] sm:$0xf0]  ;;  %v3178_v14 = vld [vmem:[#allocation4 + $0x124] sm:$0xf]  ;;  %v2405_v16 = vor.u32 %v3154_v12, %v2402_v13  ;;  %v2498_v17 = vld [vmem:[#allocation4 + $0x12c] sm:$0xf0] }
  0x4d   :  { %v2729_v63 = vor.u32 %v3235_v60, %v2726_v61  ;;  %v3196_v60 = vld [vmem:[#allocation4 + $0x1b4] sm:$0xf]  ;;  %v2570_v61 = vld [vmem:[#allocation4 + $0x1bc] sm:$0xf0]  ;;  %v3193_v12 = vld [vmem:[#allocation4 + $0x19c] sm:$0xf] }
  0x4e   :  { %1179 = vmatpush.bf16.msra.mxu0 %v2377_v6  ;;  %1193 = vmatpush.bf16.msra.mxu1 %v2473_v10  ;;  %v3208_v6 = vld [vmem:[#allocation4 + $0x214] sm:$0xf]  ;;  %v2714_v10 = vld [vmem:[#allocation4 + $0x2dc] sm:$0xf0]  ;;  %v2558_v13 = vld [vmem:[#allocation4 + $0x1a4] sm:$0xf0] }
  0x4f   :  { %v2621_v9 = vor.u32 %v3208_v6, %v2618_v7  ;;  %v2717_v11 = vor.u32 %v3232_v8, %v2714_v10 }
  0x50   :  { %1207 = vmatpush.bf16.msra.mxu2 %v2569_v25  ;;  %1221 = vmatpush.bf16.msra.mxu3 %v2665_v29  ;;  %v2705_v25 = vor.u32 %v3229_v23, %v2702_v24  ;;  %v3175_v29 = vld [vmem:[#allocation4 + $0x10c] sm:$0xf]  ;;  %v3214_v23 = vld [vmem:[#allocation4 + $0x244] sm:$0xf]  ;;  %v2642_v24 = vld [vmem:[#allocation4 + $0x24c] sm:$0xf0] }
  0x51   :  { %v2645_v26 = vor.u32 %v3214_v23, %v2642_v24  ;;  %v3237_v23 = vld [vmem:[#allocation4 + $0x2f8] sm:$0xf0] }
  0x52   :  { %1180 = vmatpush.bf16.msra.mxu0 %v2365_v19  ;;  %1194 = vmatpush.bf16.msra.mxu1 %v2461_v21  ;;  %v2501_v19 = vor.u32 %v3178_v14, %v2498_v17  ;;  %v2606_v21 = vld [vmem:[#allocation4 + $0x204] sm:$0xf0]  ;;  %v3217_v14 = vld [vmem:[#allocation4 + $0x25c] sm:$0xf]  ;;  %v2561_v17 = vor.u32 %v3193_v12, %v2558_v13  ;;  %v3186_v12 = vld [vmem:[#allocation4 + $0x160] sm:$0xf0] }
  0x53   :  { %v2609_v22 = vor.u32 %v3205_v20, %v2606_v21  ;;  %v3190_v20 = vld [vmem:[#allocation4 + $0x184] sm:$0xf]  ;;  %v2546_v21 = vld [vmem:[#allocation4 + $0x18c] sm:$0xf0] }
  0x54   :  { %1208 = vmatpush.bf16.msra.mxu2 %v2557_v43  ;;  %1222 = vmatpush.bf16.msra.mxu3 %v2653_v45  ;;  %v2474_v45 = vld [vmem:[#allocation4 + $0xfc] sm:$0xf0]  ;;  %v2636_v13 = vld [vmem:[#allocation4 + $0x230] sm:$0xf] }
  0x55   :  { %v2477_v47 = vor.u32 %v3172_v41, %v2474_v45 }
  0x56   :  { %1181 = vmatpush.bf16.msra.mxu0 %v2353_v30  ;;  %1195 = vmatpush.bf16.msra.mxu1 %v2449_v34  ;;  %v2486_v30 = vld [vmem:[#allocation4 + $0x114] sm:$0xf0]  ;;  %v3226_v34 = vld [vmem:[#allocation4 + $0x2a4] sm:$0xf] }
  0x57   :  { %v2489_v31 = vor.u32 %v3175_v29, %v2486_v30 }
  0x58   :  { %1209 = vmatpush.bf16.msra.mxu2 %v2545_v54  ;;  %1223 = vmatpush.bf16.msra.mxu3 %v2641_v58  ;;  %v3145_v54 = vld [vmem:[#allocation4 + $0x1c] sm:$0xf]  ;;  %v2462_v58 = vld [vmem:[#allocation4 + $0xe4] sm:$0xf0] }
  0x59   :  { %v2369_v57 = vor.u32 %v3145_v54, %v2366_v55  ;;  %v2465_v59 = vor.u32 %v3169_v56, %v2462_v58  ;;  %v2540_v55 = vld [vmem:[#allocation4 + $0x170] sm:$0xf]  ;;  %v3189_v56 = vld [vmem:[#allocation4 + $0x178] sm:$0xf0] }
  0x5a   :  { %1230 = vmatpush.bf16.msrb.mxu0 %v2441_v38  ;;  %1244 = vmatpush.bf16.msrb.mxu1 %v2537_v39  ;;  %v2693_v38 = vor.u32 %v3226_v34, %v2690_v36  ;;  %v3148_v39 = vld [vmem:[#allocation4 + $0x34] sm:$0xf]  ;;  %v3615_v34 = vld [vmem:[%s3739_s4] sm:$0xff] }
  0x5b   :  { %v2381_v44 = vor.u32 %v3148_v39, %v2378_v40  ;;  %v470_v36 = vperm.slane %v3615_v34, 0  ;;  %v471_v39 = vperm.slane %v3615_v34, 1  ;;  %v472_v54 = vperm.slane %v3615_v34, 2 }
  0x5c   :  { %1258 = vmatpush.bf16.msrb.mxu2 %v2633_v62  ;;  %1272 = vmatpush.bf16.msrb.mxu3 %v2729_v63  ;;  %v3220_v62 = vld [vmem:[#allocation4 + $0x274] sm:$0xf]  ;;  %v2573_v63 = vor.u32 %v3196_v60, %v2570_v61 }
  0x5d   :  { %v2669_v2 = vor.u32 %v3220_v62, %v2666_v0 }
  0x5e   :  { %1231 = vmatpush.bf16.msrb.mxu0 %v2429_v49  ;;  %1245 = vmatpush.bf16.msrb.mxu1 %v2525_v53  ;;  %v2582_v49 = vld [vmem:[#allocation4 + $0x1d4] sm:$0xf0]  ;;  %v2681_v53 = vor.u32 %v3223_v51, %v2678_v52  ;;  %v2444_v52 = vld [vmem:[#allocation4 + $0xb0] sm:$0xf] }
  0x5f   :  { %v2585_v50 = vor.u32 %v3199_v48, %v2582_v49 }
  0x60   :  { %1259 = vmatpush.bf16.msrb.mxu2 %v2621_v9  ;;  %1273 = vmatpush.bf16.msrb.mxu3 %v2717_v11  ;;  %v2450_v9 = vld [vmem:[#allocation4 + $0xcc] sm:$0xf0] }
  0x62   :  { %1232 = vmatpush.bf16.msrb.mxu0 %v2417_v3  ;;  %1246 = vmatpush.bf16.msrb.mxu1 %v2513_v5  ;;  %v3142_v3 = vld [vmem:[#allocation4 + $0x4] sm:$0xf] }
  0x63   :  { %v3166_v5 = vld [vmem:[#allocation4 + $0xc4] sm:$0xf]  ;;  %v2357_v8 = vor.u32 %v3142_v3, %v2354_v4  ;;  %v2528_v4 = vld [vmem:[#allocation4 + $0x158] sm:$0xf] }
  0x64   :  { %1260 = vmatpush.bf16.msrb.mxu2 %v2609_v22  ;;  %1274 = vmatpush.bf16.msrb.mxu3 %v2705_v25  ;;  %v2453_v11 = vor.u32 %v3166_v5, %v2450_v9  ;;  %v2549_v22 = vor.u32 %v3190_v20, %v2546_v21  ;;  %v3162_v3 = vld [vmem:[#allocation4 + $0xa0] sm:$0xf0]  ;;  %v475_v20 = vperm.slane %v3615_v34, 5  ;;  %v476_v21 = vperm.slane %v3615_v34, 6 }
  0x66   :  { %1233 = vmatpush.bf16.msrb.mxu0 %v2405_v16  ;;  %1247 = vmatpush.bf16.msrb.mxu1 %v2501_v19  ;;  %v2654_v16 = vld [vmem:[#allocation4 + $0x264] sm:$0xf0] }
  0x67   :  { %v2657_v19 = vor.u32 %v3217_v14, %v2654_v16  ;;  %v3213_v14 = vld [vmem:[#allocation4 + $0x238] sm:$0xf0] }
  0x68   :  { %1261 = vmatpush.bf16.msrb.mxu2 %v2597_v35  ;;  %1275 = vmatpush.bf16.msrb.mxu3 %v2693_v38 }
  0x6a   :  { %1234 = vmatpush.bf16.msrb.mxu0 %v2393_v28  ;;  %1248 = vmatpush.bf16.msrb.mxu1 %v2489_v31 }
  0x6c   :  { %1262 = vmatpush.bf16.msrb.mxu2 %v2585_v50  ;;  %1276 = vmatpush.bf16.msrb.mxu3 %v2681_v53  ;;  %v3165_v53 = vld [vmem:[#allocation4 + $0xb8] sm:$0xf0] }
  0x6d   :  { %v2445_v62 = vor.u32 %v3165_v53, %v2444_v52  ;;  %v3156_v52 = vld [vmem:[#allocation4 + $0x70] sm:$0xf0] }
  0x6e   :  { %1235 = vmatpush.bf16.msrb.mxu0 %v2381_v44  ;;  %1249 = vmatpush.bf16.msrb.mxu1 %v2477_v47 }
  0x70   :  { %1263 = vmatpush.bf16.msrb.mxu2 %v2573_v63  ;;  %1277 = vmatpush.bf16.msrb.mxu3 %v2669_v2  ;;  %v2432_v2 = vld [vmem:[#allocation4 + $0x98] sm:$0xf] }
  0x72   :  { %1236 = vmatpush.bf16.msrb.mxu0 %v2369_v57  ;;  %1250 = vmatpush.bf16.msrb.mxu1 %v2465_v59  ;;  %v473_v59 = vperm.slane %v3615_v34, 3 }
  0x74   :  { %1264 = vmatpush.bf16.msrb.mxu2 %v2561_v17  ;;  %1278 = vmatpush.bf16.msrb.mxu3 %v2657_v19 }
  0x76   :  { %1237 = vmatpush.bf16.msrb.mxu0 %v2357_v8  ;;  %1251 = vmatpush.bf16.msrb.mxu1 %v2453_v11 }
  0x78   :  { %1265 = vmatpush.bf16.msrb.mxu2 %v2549_v22  ;;  %1279 = vmatpush.bf16.msrb.mxu3 %v2645_v26  ;;  %v2732_v22 = vld [vmem:[#allocation4 + $0x2f0] sm:$0xf]  ;;  %v2420_v26 = vld [vmem:[#allocation4 + $0x80] sm:$0xf] }
  0x96   :  { %v3580_v15 = vpop.f32.mrf.mxu0  ;;  %v3582_v18 = vpop.f32.mrf.mxu1 }
  0x9e   :  { %v3584_v37 = vpop.f32.mrf.mxu2  ;;  %v3586_v42 = vpop.f32.mrf.mxu3 }
  0x9f   :  { %v3588_v43 = vpop.f32.mrf.mxu0  ;;  %v3590_v46 = vpop.f32.mrf.mxu1 }
  0xa6   :  { %v3592_v1 = vpop.f32.mrf.mxu2  ;;  %v3594_v6 = vpop.f32.mrf.mxu3 }
  0xa7   :  { %v3596_v7 = vpop.f32.mrf.mxu0  ;;  %v3598_v10 = vpop.f32.mrf.mxu1 }
  0xae   :  { %v3600_v25 = vpop.f32.mrf.mxu2  ;;  %v3602_v27 = vpop.f32.mrf.mxu3 }
  0xaf   :  { %v3604_v28 = vpop.f32.mrf.mxu0  ;;  %v3606_v29 = vpop.f32.mrf.mxu1 }
  0xb6   :  { %v3608_v30 = vpop.f32.mrf.mxu2  ;;  %v3610_v31 = vpop.f32.mrf.mxu3 }
  0xb7   :  { %v365_v32 = vpop.f32.mrf.mxu0  ;;  %v379_v33 = vpop.f32.mrf.mxu1 }
  0xb8   :  { %v366_v35 = vadd.f32 %v365_v32, %v3580_v15  ;;  %v380_v38 = vadd.f32 %v379_v33, %v3582_v18  ;;  %v3159_v32 = vld [vmem:[#allocation4 + $0x88] sm:$0xf0]  ;;  %v2516_v33 = vld [vmem:[#allocation4 + $0x140] sm:$0xf] }
  0xba   :  { %v486_v45 = vadd.f32 %v470_v36, %v366_v35  ;;  %v487_v49 = vadd.f32 %v471_v39, %v380_v38  ;;  %v2624_v38 = vld [vmem:[#allocation4 + $0x218] sm:$0xf] }
  0xbc   :  { %v502_v57 = vmax.f32 %v486_v45, 0.0  ;;  %v503_v60 = vmax.f32 %v487_v49, 0.0  ;;  %v3234_v45 = vld [vmem:[#allocation4 + $0x2e0] sm:$0xf0] }
  0xbe   :  { %v393_v40 = vpop.f32.mrf.mxu2  ;;  %v407_v41 = vpop.f32.mrf.mxu3 }
  0xbf   :  { %v367_v44 = vpop.f32.mrf.mxu0  ;;  %v381_v48 = vpop.f32.mrf.mxu1  ;;  %v394_v15 = vadd.f32 %v393_v40, %v3584_v37  ;;  %v408_v58 = vadd.f32 %v407_v41, %v3586_v42  ;;  %v2541_v37 = vor.u32 %v3189_v56, %v2540_v55 }
  0xc0   :  { %v368_v47 = vadd.f32 %v367_v44, %v3588_v43  ;;  %v382_v50 = vadd.f32 %v381_v48, %v3590_v46  ;;  %v474_v46 = vperm.slane %v3615_v34, 4  ;;  %v2720_v44 = vld [vmem:[#allocation4 + $0x2d8] sm:$0xf] }
  0xc1   :  { %v488_v5 = vadd.f32 %v472_v54, %v394_v15  ;;  %v489_v16 = vadd.f32 %v473_v59, %v408_v58 }
  0xc2   :  { %v494_v51 = vadd.f32 %v470_v36, %v368_v47  ;;  %v495_v18 = vadd.f32 %v471_v39, %v382_v50  ;;  %v3183_v36 = vld [vmem:[#allocation4 + $0x148] sm:$0xf0]  ;;  %v3210_v39 = vld [vmem:[#allocation4 + $0x220] sm:$0xf0]  ;;  %v2637_v50 = vor.u32 %v3213_v14, %v2636_v13  ;;  %v2708_v13 = vld [vmem:[#allocation4 + $0x2c0] sm:$0xf] }
  0xc3   :  { %v504_v40 = vmax.f32 %v488_v5, 0.0  ;;  %v505_v47 = vmax.f32 %v489_v16, 0.0  ;;  %v2517_v58 = vor.u32 %v3183_v36, %v2516_v33  ;;  %v3231_v14 = vld [vmem:[#allocation4 + $0x2c8] sm:$0xf0]  ;;  %v2396_v16 = vld [vmem:[#allocation4 + $0x50] sm:$0xf] }
  0xc4   :  { %v510_v43 = vmax.f32 %v494_v51, 0.0  ;;  %v511_v61 = vmax.f32 %v495_v18, 0.0  ;;  %v2408_v51 = vld [vmem:[#allocation4 + $0x68] sm:$0xf]  ;;  %v2421_v18 = vor.u32 %v3159_v32, %v2420_v26 }
  0xc5   :  { %v2600_v33 = vld [vmem:[#allocation4 + $0x1e8] sm:$0xf] }
  0xc6   :  { %v3628_v63 = vpack.c.bf16 %v510_v43, %v502_v57  ;;  %v395_v0 = vpop.f32.mrf.mxu2  ;;  %v3630_v8 = vpack.c.bf16 %v511_v61, %v503_v60  ;;  %v409_v9 = vpop.f32.mrf.mxu3  ;;  %v477_v57 = vperm.slane %v3615_v34, 7  ;;  %v2625_v60 = vor.u32 %v3210_v39, %v2624_v38  ;;  %v2696_v39 = vld [vmem:[#allocation4 + $0x2a8] sm:$0xf] }
  0xc7   :  { %v396_v42 = vadd.f32 %v395_v0, %v3592_v1  ;;  %v421_v11 = vpop.f32.mrf.mxu0  ;;  %v410_v17 = vadd.f32 %v409_v9, %v3594_v6  ;;  %v435_v19 = vpop.f32.mrf.mxu1  ;;  %v2433_v1 = vor.u32 %v3162_v3, %v2432_v2  ;;  %v2529_v6 = vor.u32 %v3186_v12, %v2528_v4  ;;  %v3180_v0 = vld [vmem:[#allocation4 + $0x130] sm:$0xf0]  ;;  %v2612_v9 = vld [vmem:[#allocation4 + $0x200] sm:$0xf] }
  0xc8   :  { %1182 = vmatmul.bf16.vlgmr.msra.gmra.mxu0 %v3628_v63  ;;  %1196 = vmatmul.bf16.vlgmr.msra.gmra.mxu1 %v3630_v8  ;;  %v422_v49 = vadd.f32 %v421_v11, %v3596_v7  ;;  %v436_v15 = vadd.f32 %v435_v19, %v3598_v10  ;;  %v2721_v61 = vor.u32 %v3234_v45, %v2720_v44  ;;  %v2504_v10 = vld [vmem:[#allocation4 + $0x128] sm:$0xf]  ;;  %v3207_v11 = vld [vmem:[#allocation4 + $0x208] sm:$0xf0]  ;;  %v3153_v19 = vld [vmem:[#allocation4 + $0x58] sm:$0xf0] }
  0xc9   :  { %v496_v24 = vadd.f32 %v472_v54, %v396_v42  ;;  %1286 = vmatpush.bf16.msra.mxu0 %v2445_v62  ;;  %v497_v35 = vadd.f32 %v473_v59, %v410_v17  ;;  %1300 = vmatpush.bf16.msra.mxu1 %v2541_v37  ;;  %v2733_v54 = vor.u32 %v3237_v23, %v2732_v22  ;;  %v3177_v22 = vld [vmem:[#allocation4 + $0x118] sm:$0xf0] }
  0xca   :  { %v2409_v62 = vor.u32 %v3156_v52, %v2408_v51  ;;  %v490_v37 = vadd.f32 %v474_v46, %v422_v49  ;;  %v491_v4 = vadd.f32 %v475_v20, %v436_v15  ;;  %v2505_v12 = vor.u32 %v3180_v0, %v2504_v10  ;;  %v2480_v49 = vld [vmem:[#allocation4 + $0xf8] sm:$0xf]  ;;  %v3171_v10 = vld [vmem:[#allocation4 + $0xe8] sm:$0xf0] }
  0xcb   :  { %v512_v41 = vmax.f32 %v496_v24, 0.0  ;;  %v513_v48 = vmax.f32 %v497_v35, 0.0  ;;  %v3204_v35 = vld [vmem:[#allocation4 + $0x1f0] sm:$0xf0]  ;;  %v2397_v38 = vor.u32 %v3153_v19, %v2396_v16  ;;  %v2916_v19 = vld [vmem:[#allocation6 + $0x168] sm:$0xf] }
  0xcc   :  { %v506_v23 = vmax.f32 %v490_v37, 0.0  ;;  %v507_v26 = vmax.f32 %v491_v4, 0.0  ;;  %v2601_v52 = vor.u32 %v3204_v35, %v2600_v33  ;;  %v2672_v4 = vld [vmem:[#allocation4 + $0x278] sm:$0xf] }
  0xcd   :  { %v3639_v53 = vpack.c.bf16 %v512_v41, %v504_v40  ;;  %1287 = vmatpush.bf16.msra.mxu0 %v2433_v1  ;;  %v3642_v55 = vpack.c.bf16 %v513_v48, %v505_v47  ;;  %1301 = vmatpush.bf16.msra.mxu1 %v2529_v6  ;;  %v2613_v1 = vor.u32 %v3207_v11, %v2612_v9  ;;  %v3228_v40 = vld [vmem:[#allocation4 + $0x2b0] sm:$0xf0]  ;;  %v2384_v41 = vld [vmem:[#allocation4 + $0x38] sm:$0xf]  ;;  %v3150_v48 = vld [vmem:[#allocation4 + $0x40] sm:$0xf0] }
  0xce   :  { %v449_v56 = vpop.f32.mrf.mxu2  ;;  %v463_v7 = vpop.f32.mrf.mxu3  ;;  %v3222_v11 = vld [vmem:[#allocation4 + $0x280] sm:$0xf0] }
  0xcf   :  { %v450_v59 = vadd.f32 %v449_v56, %v3600_v25  ;;  %1210 = vmatmul.bf16.vlgmr.msra.gmra.mxu2 %v3639_v53  ;;  %v423_v43 = vpop.f32.mrf.mxu0  ;;  %v464_v2 = vadd.f32 %v463_v7, %v3602_v27  ;;  %1224 = vmatmul.bf16.vlgmr.msra.gmra.mxu3 %v3642_v55  ;;  %v437_v25 = vpop.f32.mrf.mxu1  ;;  %v3201_v56 = vld [vmem:[#allocation4 + $0x1d8] sm:$0xf0] }
  0xd0   :  { %1314 = vmatpush.bf16.msra.mxu2 %v2637_v50  ;;  %v424_v3 = vadd.f32 %v423_v43, %v3604_v28  ;;  %1328 = vmatpush.bf16.msra.mxu3 %v2733_v54  ;;  %v438_v42 = vadd.f32 %v437_v25, %v3606_v29  ;;  %v2492_v29 = vld [vmem:[#allocation4 + $0x110] sm:$0xf]  ;;  %v3174_v50 = vld [vmem:[#allocation4 + $0x100] sm:$0xf0]  ;;  %v2697_v54 = vor.u32 %v3228_v40, %v2696_v39  ;;  %v3225_v7 = vld [vmem:[#allocation4 + $0x298] sm:$0xf0] }
  0xd1   :  { %v3656_v5 = vadd.f32 %v476_v21, %v450_v59  ;;  %1288 = vmatpush.bf16.msra.mxu0 %v2421_v18  ;;  %v3661_v27 = vadd.f32 %v477_v57, %v464_v2  ;;  %1302 = vmatpush.bf16.msra.mxu1 %v2517_v58  ;;  %v2588_v18 = vld [vmem:[#allocation4 + $0x1d0] sm:$0xf]  ;;  %v2481_v59 = vor.u32 %v3174_v50, %v2480_v49  ;;  %v2372_v43 = vld [vmem:[#allocation4 + $0x20] sm:$0xf]  ;;  %v3198_v25 = vld [vmem:[#allocation4 + $0x1c0] sm:$0xf0] }
  0xd2   :  { %v498_v28 = vadd.f32 %v474_v46, %v424_v3  ;;  %v499_v17 = vadd.f32 %v475_v20, %v438_v42  ;;  %v2709_v46 = vor.u32 %v3231_v14, %v2708_v13  ;;  %v2493_v20 = vor.u32 %v3177_v22, %v2492_v29  ;;  %v3168_v13 = vld [vmem:[#allocation4 + $0xd0] sm:$0xf0]  ;;  %v2820_v14 = vld [vmem:[#allocation6 + $0xa8] sm:$0xf]  ;;  %v2904_v39 = vld [vmem:[#allocation6 + $0x150] sm:$0xf] }
  0xd3   :  { %v509_v0 = vmax.f32 %v3661_v27, 0.0  ;;  %v2589_v2 = vor.u32 %v3201_v56, %v2588_v18  ;;  %v2456_v27 = vld [vmem:[#allocation4 + $0xc8] sm:$0xf]  ;;  %v3284_v29 = vld [vmem:[#allocation6 + $0x170] sm:$0xf0]  ;;  %v2673_v22 = vor.u32 %v3222_v11, %v2672_v4 }
  0xd4   :  { %v514_v24 = vmax.f32 %v498_v28, 0.0  ;;  %1315 = vmatpush.bf16.msra.mxu2 %v2625_v60  ;;  %v515_v32 = vmax.f32 %v499_v17, 0.0  ;;  %1329 = vmatpush.bf16.msra.mxu3 %v2721_v61  ;;  %v3147_v60 = vld [vmem:[#allocation4 + $0x28] sm:$0xf0]  ;;  %v508_v61 = vmax.f32 %v3656_v5, 0.0  ;;  %v2917_v35 = vor.u32 %v3284_v29, %v2916_v19 }
  0xd5   :  { %1289 = vmatpush.bf16.msra.mxu0 %v2409_v62  ;;  %1303 = vmatpush.bf16.msra.mxu1 %v2505_v12  ;;  %v2468_v62 = vld [vmem:[#allocation4 + $0xe0] sm:$0xf]  ;;  %v2373_v5 = vor.u32 %v3147_v60, %v2372_v43  ;;  %v2360_v28 = vld [vmem:[#allocation4 + $0x8] sm:$0xf]  ;;  %v3144_v12 = vld [vmem:[#allocation4 + $0x10] sm:$0xf0] }
  0xd6   :  { %v3667_v6 = vpack.c.bf16 %v514_v24, %v506_v23  ;;  %v451_v36 = vpop.f32.mrf.mxu2  ;;  %v3669_v44 = vpack.c.bf16 %v515_v32, %v507_v26  ;;  %v465_v47 = vpop.f32.mrf.mxu3  ;;  %v2469_v9 = vor.u32 %v3171_v10, %v2468_v62  ;;  %v3260_v17 = vld [vmem:[#allocation6 + $0xb0] sm:$0xf0]  ;;  %v2564_v23 = vld [vmem:[#allocation4 + $0x1a0] sm:$0xf]  ;;  %v3195_v24 = vld [vmem:[#allocation4 + $0x1a8] sm:$0xf0]  ;;  %v2457_v26 = vor.u32 %v3168_v13, %v2456_v27 }
  0xd7   :  { %v452_v45 = vadd.f32 %v451_v36, %v3608_v30  ;;  %v466_v51 = vadd.f32 %v465_v47, %v3610_v31  ;;  %v2684_v30 = vld [vmem:[#allocation4 + $0x290] sm:$0xf]  ;;  %v2385_v31 = vor.u32 %v3150_v48, %v2384_v41  ;;  %v2660_v32 = vld [vmem:[#allocation4 + $0x260] sm:$0xf]  ;;  %v2821_v33 = vor.u32 %v3260_v17, %v2820_v14  ;;  %v3281_v40 = vld [vmem:[#allocation6 + $0x158] sm:$0xf0] }
  0xd8   :  { %1316 = vmatpush.bf16.msra.mxu2 %v2613_v1  ;;  %1238 = vmatmul.bf16.vlgmr.msrb.gmra.mxu0 %v3628_v63  ;;  %v2685_v34 = vor.u32 %v3225_v7, %v2684_v30  ;;  %v2361_v1 = vor.u32 %v3144_v12, %v2360_v28  ;;  %v2808_v36 = vld [vmem:[#allocation6 + $0x90] sm:$0xf]  ;;  %v3192_v47 = vld [vmem:[#allocation4 + $0x190] sm:$0xf0]  ;;  %v2648_v48 = vld [vmem:[#allocation4 + $0x248] sm:$0xf] }
  0xd9   :  { %v500_v15 = vadd.f32 %v476_v21, %v452_v45  ;;  %1330 = vmatpush.bf16.msra.mxu3 %v2709_v46  ;;  %1252 = vmatmul.bf16.vlgmr.msrb.gmra.mxu1 %v3630_v8  ;;  %v501_v58 = vadd.f32 %v477_v57, %v466_v51  ;;  %v2576_v57 = vld [vmem:[#allocation4 + $0x1b8] sm:$0xf]  ;;  %v3219_v46 = vld [vmem:[#allocation4 + $0x268] sm:$0xf0]  ;;  %v2552_v45 = vld [vmem:[#allocation4 + $0x188] sm:$0xf] }
  0xda   :  { %1290 = vmatpush.bf16.msra.mxu0 %v2397_v38  ;;  %1304 = vmatpush.bf16.msra.mxu1 %v2493_v20  ;;  %v2577_v16 = vor.u32 %v3198_v25, %v2576_v57  ;;  %v2565_v38 = vor.u32 %v3195_v24, %v2564_v23  ;;  %v3257_v20 = vld [vmem:[#allocation6 + $0x98] sm:$0xf0]  ;;  %v2661_v41 = vor.u32 %v3219_v46, %v2660_v32  ;;  %v3216_v49 = vld [vmem:[#allocation4 + $0x250] sm:$0xf0]  ;;  %v3012_v50 = vld [vmem:[#allocation6 + $0x228] sm:$0xf] }
  0xdb   :  { %v516_v21 = vmax.f32 %v500_v15, 0.0  ;;  %v517_v37 = vmax.f32 %v501_v58, 0.0  ;;  %v3308_v51 = vld [vmem:[#allocation6 + $0x230] sm:$0xf0]  ;;  %v2905_v15 = vor.u32 %v3281_v40, %v2904_v39  ;;  %v2796_v56 = vld [vmem:[#allocation6 + $0x78] sm:$0xf]  ;;  %v2553_v30 = vor.u32 %v3192_v47, %v2552_v45 }
  0xdc   :  { %1317 = vmatpush.bf16.msra.mxu2 %v2601_v52  ;;  %v2809_v52 = vor.u32 %v3257_v20, %v2808_v36  ;;  %v3332_v18 = vld [vmem:[#allocation6 + $0x2f0] sm:$0xf0]  ;;  %v3254_v58 = vld [vmem:[#allocation6 + $0x80] sm:$0xf0]  ;;  %v2649_v7 = vor.u32 %v3216_v49, %v2648_v48  ;;  %v3013_v43 = vor.u32 %v3308_v51, %v3012_v50  ;;  %v2880_v57 = vld [vmem:[#allocation6 + $0x120] sm:$0xf] }
  0xdd   :  { %v3681_v3 = vpack.c.bf16 %v516_v21, %v508_v61  ;;  %1331 = vmatpush.bf16.msra.mxu3 %v2697_v54  ;;  %v3683_v42 = vpack.c.bf16 %v517_v37, %v509_v0  ;;  %v3108_v54 = vld [vmem:[#allocation6 + $0x2e8] sm:$0xf]  ;;  %v3000_v61 = vld [vmem:[#allocation6 + $0x210] sm:$0xf]  ;;  %v3305_v21 = vld [vmem:[#allocation6 + $0x218] sm:$0xf0]  ;;  %v2797_v62 = vor.u32 %v3254_v58, %v2796_v56 }
  0xde   :  { %1291 = vmatpush.bf16.msra.mxu0 %v2385_v31  ;;  %1305 = vmatpush.bf16.msra.mxu1 %v2481_v59  ;;  %v2892_v31 = vld [vmem:[#allocation6 + $0x138] sm:$0xf]  ;;  %v3278_v59 = vld [vmem:[#allocation6 + $0x140] sm:$0xf0]  ;;  %v3109_v60 = vor.u32 %v3332_v18, %v3108_v54  ;;  %v3096_v0 = vld [vmem:[#allocation6 + $0x2d0] sm:$0xf] }
  0xdf   :  { %1266 = vmatmul.bf16.vlgmr.msrb.gmra.mxu2 %v3639_v53  ;;  %1280 = vmatmul.bf16.vlgmr.msrb.gmra.mxu3 %v3642_v55  ;;  %v2893_v10 = vor.u32 %v3278_v59, %v2892_v31  ;;  %v3329_v37 = vld [vmem:[#allocation6 + $0x2d8] sm:$0xf0]  ;;  %v3275_v25 = vld [vmem:[#allocation6 + $0x128] sm:$0xf0]  ;;  %v3084_v28 = vld [vmem:[#allocation6 + $0x2b8] sm:$0xf] }
  0xe0   :  { %1318 = vmatpush.bf16.msra.mxu2 %v2589_v2  ;;  %v2784_v2 = vld [vmem:[#allocation6 + $0x60] sm:$0xf]  ;;  %v3097_v4 = vor.u32 %v3329_v37, %v3096_v0  ;;  %v2881_v11 = vor.u32 %v3275_v25, %v2880_v57  ;;  %v3326_v12 = vld [vmem:[#allocation6 + $0x2c0] sm:$0xf0]  ;;  %v2772_v27 = vld [vmem:[#allocation6 + $0x48] sm:$0xf] }
  0xe1   :  { %1332 = vmatpush.bf16.msra.mxu3 %v2685_v34  ;;  %v3251_v34 = vld [vmem:[#allocation6 + $0x68] sm:$0xf0]  ;;  %v3248_v13 = vld [vmem:[#allocation6 + $0x50] sm:$0xf0]  ;;  %v2868_v14 = vld [vmem:[#allocation6 + $0x108] sm:$0xf]  ;;  %v3085_v19 = vor.u32 %v3326_v12, %v3084_v28 }
  0xe2   :  { %1292 = vmatpush.bf16.msra.mxu0 %v2373_v5  ;;  %1306 = vmatpush.bf16.msra.mxu1 %v2469_v9  ;;  %v3302_v5 = vld [vmem:[#allocation6 + $0x200] sm:$0xf0]  ;;  %v2785_v9 = vor.u32 %v3251_v34, %v2784_v2  ;;  %v2976_v29 = vld [vmem:[#allocation6 + $0x1e0] sm:$0xf]  ;;  %v2773_v23 = vor.u32 %v3248_v13, %v2772_v27  ;;  %v2760_v32 = vld [vmem:[#allocation6 + $0x30] sm:$0xf] }
  0xe3   :  { %v3245_v46 = vld [vmem:[#allocation6 + $0x38] sm:$0xf0]  ;;  %v2964_v36 = vld [vmem:[#allocation6 + $0x1c8] sm:$0xf]  ;;  %v2748_v45 = vld [vmem:[#allocation6 + $0x18] sm:$0xf] }
  0xe4   :  { %1319 = vmatpush.bf16.msra.mxu2 %v2577_v16  ;;  %v3272_v16 = vld [vmem:[#allocation6 + $0x110] sm:$0xf0]  ;;  %v2761_v20 = vor.u32 %v3245_v46, %v2760_v32  ;;  %v3060_v40 = vld [vmem:[#allocation6 + $0x288] sm:$0xf]  ;;  %v3242_v47 = vld [vmem:[#allocation6 + $0x20] sm:$0xf0] }
  0xe5   :  { %1333 = vmatpush.bf16.msra.mxu3 %v2673_v22  ;;  %v3299_v22 = vld [vmem:[#allocation6 + $0x1e8] sm:$0xf0]  ;;  %v2869_v24 = vor.u32 %v3272_v16, %v2868_v14  ;;  %v2844_v48 = vld [vmem:[#allocation6 + $0xd8] sm:$0xf]  ;;  %v3266_v49 = vld [vmem:[#allocation6 + $0xe0] sm:$0xf0]  ;;  %v2749_v18 = vor.u32 %v3242_v47, %v2748_v45 }
  0xe6   :  { %1293 = vmatpush.bf16.msra.mxu0 %v2361_v1  ;;  %1307 = vmatpush.bf16.msra.mxu1 %v2457_v26  ;;  %v3072_v1 = vld [vmem:[#allocation6 + $0x2a0] sm:$0xf]  ;;  %v3323_v26 = vld [vmem:[#allocation6 + $0x2a8] sm:$0xf0]  ;;  %v3048_v54 = vld [vmem:[#allocation6 + $0x270] sm:$0xf]  ;;  %v2845_v56 = vor.u32 %v3266_v49, %v2844_v48 }
  0xe7   :  { %v2736_v58 = vld [vmem:[#allocation6] sm:$0xf]  ;;  %v3239_v31 = vld [vmem:[#allocation6 + $0x8] sm:$0xf0]  ;;  %v2940_v0 = vld [vmem:[#allocation6 + $0x198] sm:$0xf] }
  0xe8   :  { %1320 = vmatpush.bf16.msra.mxu2 %v2565_v38  ;;  %v3296_v38 = vld [vmem:[#allocation6 + $0x1d0] sm:$0xf0]  ;;  %v2832_v59 = vld [vmem:[#allocation6 + $0xc0] sm:$0xf]  ;;  %v3290_v37 = vld [vmem:[#allocation6 + $0x1a0] sm:$0xf0]  ;;  %v2737_v2 = vor.u32 %v3239_v31, %v2736_v58 }
  0xe9   :  { %1334 = vmatpush.bf16.msra.mxu3 %v2661_v41  ;;  %1294 = vmatmul.bf16.vlgmr.msra.gmra.mxu0 %v3628_v63  ;;  %v3001_v63 = vor.u32 %v3305_v21, %v3000_v61  ;;  %v3320_v41 = vld [vmem:[#allocation6 + $0x290] sm:$0xf0]  ;;  %v2965_v50 = vor.u32 %v3296_v38, %v2964_v36  ;;  %v2822_v61 = vld [vmem:[#allocation6 + $0xb4] sm:$0xf0]  ;;  %v3283_v21 = vld [vmem:[#allocation6 + $0x16c] sm:$0xf] }
  0xea   :  { %1996 = vmatpush.bf16.msrb.mxu0 %v2821_v33  ;;  %2010 = vmatpush.bf16.msrb.mxu1 %v2917_v35  ;;  %v3269_v33 = vld [vmem:[#allocation6 + $0xf8] sm:$0xf0]  ;;  %v3073_v35 = vor.u32 %v3323_v26, %v3072_v1  ;;  %v3061_v51 = vor.u32 %v3320_v41, %v3060_v40  ;;  %v3036_v57 = vld [vmem:[#allocation6 + $0x258] sm:$0xf]  ;;  %v3314_v25 = vld [vmem:[#allocation6 + $0x260] sm:$0xf0] }
  0xeb   :  { %1308 = vmatmul.bf16.vlgmr.msra.gmra.mxu1 %v3630_v8  ;;  %v2988_v8 = vld [vmem:[#allocation6 + $0x1f8] sm:$0xf]  ;;  %v2906_v28 = vld [vmem:[#allocation6 + $0x15c] sm:$0xf0]  ;;  %v3037_v12 = vor.u32 %v3314_v25, %v3036_v57  ;;  %v3287_v13 = vld [vmem:[#allocation6 + $0x188] sm:$0xf0] }
  0xec   :  { %1321 = vmatpush.bf16.msra.mxu2 %v2553_v30  ;;  %v2989_v17 = vor.u32 %v3302_v5, %v2988_v8  ;;  %v3317_v30 = vld [vmem:[#allocation6 + $0x278] sm:$0xf0]  ;;  %v3256_v8 = vld [vmem:[#allocation6 + $0x94] sm:$0xf]  ;;  %v2941_v5 = vor.u32 %v3290_v37, %v2940_v0  ;;  %v2928_v27 = vld [vmem:[#allocation6 + $0x180] sm:$0xf] }
  0xed   :  { %1335 = vmatpush.bf16.msra.mxu3 %v2649_v7  ;;  %v3263_v7 = vld [vmem:[#allocation6 + $0xc8] sm:$0xf0]  ;;  %v3024_v14 = vld [vmem:[#allocation6 + $0x240] sm:$0xf]  ;;  %v2929_v1 = vor.u32 %v3287_v13, %v2928_v27  ;;  %v3253_v26 = vld [vmem:[#allocation6 + $0x7c] sm:$0xf] }
  0xee   :  { %1997 = vmatpush.bf16.msrb.mxu0 %v2809_v52  ;;  %2011 = vmatpush.bf16.msrb.mxu1 %v2905_v15  ;;  %v2952_v52 = vld [vmem:[#allocation6 + $0x1b0] sm:$0xf]  ;;  %v3293_v15 = vld [vmem:[#allocation6 + $0x1b8] sm:$0xf0]  ;;  %v2833_v34 = vor.u32 %v3263_v7, %v2832_v59  ;;  %v3311_v16 = vld [vmem:[#allocation6 + $0x248] sm:$0xf0] }
  0xef   :  { %1322 = vmatmul.bf16.vlgmr.msra.gmra.mxu2 %v3639_v53  ;;  %v2856_v53 = vld [vmem:[#allocation6 + $0xf0] sm:$0xf]  ;;  %v2798_v32 = vld [vmem:[#allocation6 + $0x84] sm:$0xf0]  ;;  %v3025_v46 = vor.u32 %v3311_v16, %v3024_v14  ;;  %v3304_v36 = vld [vmem:[#allocation6 + $0x214] sm:$0xf] }
  0xf0   :  { %2024 = vmatpush.bf16.msrb.mxu2 %v3013_v43  ;;  %1336 = vmatmul.bf16.vlgmr.msra.gmra.mxu3 %v3642_v55  ;;  %v2977_v55 = vor.u32 %v3299_v22, %v2976_v29  ;;  %v2857_v39 = vor.u32 %v3269_v33, %v2856_v53  ;;  %v3259_v43 = vld [vmem:[#allocation6 + $0xac] sm:$0xf]  ;;  %v3277_v33 = vld [vmem:[#allocation6 + $0x13c] sm:$0xf]  ;;  %v3002_v38 = vld [vmem:[#allocation6 + $0x21c] sm:$0xf0] }
  0xf1   :  { %2038 = vmatpush.bf16.msrb.mxu3 %v3109_v60  ;;  %v2953_v60 = vor.u32 %v3293_v15, %v2952_v52  ;;  %v3098_v40 = vld [vmem:[#allocation6 + $0x2dc] sm:$0xf0]  ;;  %v3250_v45 = vld [vmem:[#allocation6 + $0x64] sm:$0xf]  ;;  %v2786_v47 = vld [vmem:[#allocation6 + $0x6c] sm:$0xf0]  ;;  %v3005_v48 = vor.u32 %v3304_v36, %v3002_v38 }
  0xf2   :  { %1998 = vmatpush.bf16.msrb.mxu0 %v2797_v62  ;;  %2012 = vmatpush.bf16.msrb.mxu1 %v2893_v10  ;;  %v2918_v62 = vld [vmem:[#allocation6 + $0x174] sm:$0xf0]  ;;  %v3049_v10 = vor.u32 %v3317_v30, %v3048_v54  ;;  %v3274_v49 = vld [vmem:[#allocation6 + $0x124] sm:$0xf]  ;;  %v3301_v52 = vld [vmem:[#allocation6 + $0x1fc] sm:$0xf]  ;;  %v2789_v54 = vor.u32 %v3250_v45, %v2786_v47 }
  0xf3   :  { %v2990_v15 = vld [vmem:[#allocation6 + $0x204] sm:$0xf0]  ;;  %v3247_v58 = vld [vmem:[#allocation6 + $0x4c] sm:$0xf]  ;;  %v2774_v31 = vld [vmem:[#allocation6 + $0x54] sm:$0xf0] }
  0xf4   :  { %2025 = vmatpush.bf16.msrb.mxu2 %v3001_v63  ;;  %v2825_v63 = vor.u32 %v3259_v43, %v2822_v61  ;;  %v2993_v59 = vor.u32 %v3301_v52, %v2990_v15  ;;  %v3271_v7 = vld [vmem:[#allocation6 + $0x10c] sm:$0xf]  ;;  %v2870_v43 = vld [vmem:[#allocation6 + $0x114] sm:$0xf0]  ;;  %v3298_v61 = vld [vmem:[#allocation6 + $0x1e4] sm:$0xf] }
  0xf5   :  { %2039 = vmatpush.bf16.msrb.mxu3 %v3097_v4  ;;  %v2921_v4 = vor.u32 %v3283_v21, %v2918_v62  ;;  %v2978_v21 = vld [vmem:[#allocation6 + $0x1ec] sm:$0xf0]  ;;  %v2777_v62 = vor.u32 %v3247_v58, %v2774_v31  ;;  %v2873_v37 = vor.u32 %v3271_v7, %v2870_v43  ;;  %v3268_v25 = vld [vmem:[#allocation6 + $0xf4] sm:$0xf]  ;;  %v3241_v27 = vld [vmem:[#allocation6 + $0x1c] sm:$0xf] }
  0xf6   :  { %1999 = vmatpush.bf16.msrb.mxu0 %v2785_v9  ;;  %2013 = vmatpush.bf16.msrb.mxu1 %v2881_v11  ;;  %v2810_v9 = vld [vmem:[#allocation6 + $0x9c] sm:$0xf0]  ;;  %v3280_v11 = vld [vmem:[#allocation6 + $0x154] sm:$0xf]  ;;  %v3074_v0 = vld [vmem:[#allocation6 + $0x2ac] sm:$0xf0]  ;;  %v2981_v57 = vor.u32 %v3298_v61, %v2978_v21 }
  0xf7   :  { %v2813_v29 = vor.u32 %v3256_v8, %v2810_v9  ;;  %v2909_v22 = vor.u32 %v3280_v11, %v2906_v28  ;;  %v3295_v8 = vld [vmem:[#allocation6 + $0x1cc] sm:$0xf]  ;;  %v3062_v28 = vld [vmem:[#allocation6 + $0x294] sm:$0xf0]  ;;  %v2750_v13 = vld [vmem:[#allocation6 + $0x24] sm:$0xf0] }
  0xf8   :  { %2026 = vmatpush.bf16.msrb.mxu2 %v2989_v17  ;;  %v3307_v17 = vld [vmem:[#allocation6 + $0x22c] sm:$0xf]  ;;  %v3265_v16 = vld [vmem:[#allocation6 + $0xdc] sm:$0xf]  ;;  %v2924_v38 = vld [vmem:[#allocation6 + $0x170] sm:$0xf] }
  0xf9   :  { %2040 = vmatpush.bf16.msrb.mxu3 %v3085_v19  ;;  %v3014_v19 = vld [vmem:[#allocation6 + $0x234] sm:$0xf0]  ;;  %v3319_v11 = vld [vmem:[#allocation6 + $0x28c] sm:$0xf]  ;;  %v3261_v36 = vld [vmem:[#allocation6 + $0xb8] sm:$0xf0] }
  0xfa   :  { %2000 = vmatpush.bf16.msrb.mxu0 %v2773_v23  ;;  %2014 = vmatpush.bf16.msrb.mxu1 %v2869_v24  ;;  %v3331_v23 = vld [vmem:[#allocation6 + $0x2ec] sm:$0xf]  ;;  %v3110_v24 = vld [vmem:[#allocation6 + $0x2f4] sm:$0xf0]  ;;  %v3017_v53 = vor.u32 %v3307_v17, %v3014_v19  ;;  %v2846_v17 = vld [vmem:[#allocation6 + $0xe4] sm:$0xf0]  ;;  %v3065_v19 = vor.u32 %v3319_v11, %v3062_v28 }
  0xfb   :  { %v3313_v47 = vld [vmem:[#allocation6 + $0x25c] sm:$0xf]  ;;  %v3286_v58 = vld [vmem:[#allocation6 + $0x184] sm:$0xf]  ;;  %v2930_v31 = vld [vmem:[#allocation6 + $0x18c] sm:$0xf0] }
  0xfc   :  { %2027 = vmatpush.bf16.msrb.mxu2 %v2977_v55  ;;  %v2894_v55 = vld [vmem:[#allocation6 + $0x144] sm:$0xf0]  ;;  %v3026_v7 = vld [vmem:[#allocation6 + $0x24c] sm:$0xf0]  ;;  %v3104_v11 = vld [vmem:[#allocation6 + $0x2d8] sm:$0xf] }
  0xfd   :  { %2041 = vmatpush.bf16.msrb.mxu3 %v3073_v35  ;;  %v3113_v35 = vor.u32 %v3331_v23, %v3110_v24  ;;  %v2897_v41 = vor.u32 %v3277_v33, %v2894_v55  ;;  %v2753_v23 = vor.u32 %v3241_v27, %v2750_v13  ;;  %v3316_v24 = vld [vmem:[#allocation6 + $0x274] sm:$0xf]  ;;  %v2834_v33 = vld [vmem:[#allocation6 + $0xcc] sm:$0xf0]  ;;  %v3330_v28 = vld [vmem:[#allocation6 + $0x2e0] sm:$0xf0] }
  0xfe   :  { %2001 = vmatpush.bf16.msrb.mxu0 %v2761_v20  ;;  %2015 = vmatpush.bf16.msrb.mxu1 %v2857_v39  ;;  %v2801_v20 = vor.u32 %v3253_v26, %v2798_v32  ;;  %v3328_v39 = vld [vmem:[#allocation6 + $0x2d4] sm:$0xf]  ;;  %v3238_v26 = vld [vmem:[#allocation6 + $0x4] sm:$0xf]  ;;  %v2849_v32 = vor.u32 %v3265_v16, %v2846_v17  ;;  %v3020_v43 = vld [vmem:[#allocation6 + $0x230] sm:$0xf] }
  0xff   :  { %v3116_v21 = vld [vmem:[#allocation6 + $0x2f0] sm:$0xf]  ;;  %v2792_v27 = vld [vmem:[#allocation6 + $0x68] sm:$0xf]  ;;  %v3252_v13 = vld [vmem:[#allocation6 + $0x70] sm:$0xf0] }
 0x100   :  { %2028 = vmatpush.bf16.msrb.mxu2 %v2965_v50  ;;  %v2882_v50 = vld [vmem:[#allocation6 + $0x12c] sm:$0xf0]  ;;  %v2888_v16 = vld [vmem:[#allocation6 + $0x128] sm:$0xf]  ;;  %v3276_v17 = vld [vmem:[#allocation6 + $0x130] sm:$0xf0] }
 0x101   :  { %2042 = vmatpush.bf16.msrb.mxu3 %v3061_v51  ;;  %v3101_v51 = vor.u32 %v3328_v39, %v3098_v40  ;;  %v2885_v30 = vor.u32 %v3274_v49, %v2882_v50  ;;  %v3285_v39 = vld [vmem:[#allocation6 + $0x178] sm:$0xf0] }
 0x102   :  { %2002 = vmatpush.bf16.msrb.mxu0 %v2749_v18  ;;  %2016 = vmatpush.bf16.msrb.mxu1 %v2845_v56  ;;  %v3325_v18 = vld [vmem:[#allocation6 + $0x2bc] sm:$0xf]  ;;  %v3086_v56 = vld [vmem:[#allocation6 + $0x2c4] sm:$0xf0]  ;;  %v2925_v52 = vor.u32 %v3285_v39, %v2924_v38  ;;  %v3300_v38 = vld [vmem:[#allocation6 + $0x1f0] sm:$0xf0] }
 0x103   :  { %v3289_v40 = vld [vmem:[#allocation6 + $0x19c] sm:$0xf]  ;;  %v3080_v39 = vld [vmem:[#allocation6 + $0x2a8] sm:$0xf] }
 0x104   :  { %2029 = vmatpush.bf16.msrb.mxu2 %v2953_v60  ;;  %v3089_v60 = vor.u32 %v3325_v18, %v3086_v56  ;;  %v2912_v18 = vld [vmem:[#allocation6 + $0x158] sm:$0xf]  ;;  %v3282_v56 = vld [vmem:[#allocation6 + $0x160] sm:$0xf0] }
 0x105   :  { %2043 = vmatpush.bf16.msrb.mxu3 %v3049_v10  ;;  %v3322_v10 = vld [vmem:[#allocation6 + $0x2a4] sm:$0xf] }
 0x106   :  { %2003 = vmatpush.bf16.msrb.mxu0 %v2737_v2  ;;  %2017 = vmatpush.bf16.msrb.mxu1 %v2833_v34  ;;  %v3244_v2 = vld [vmem:[#allocation6 + $0x34] sm:$0xf]  ;;  %v2762_v34 = vld [vmem:[#allocation6 + $0x3c] sm:$0xf0] }
 0x107   :  { %v2765_v9 = vor.u32 %v3244_v2, %v2762_v34  ;;  %v3255_v2 = vld [vmem:[#allocation6 + $0x88] sm:$0xf0] }
 0x108   :  { %2030 = vmatpush.bf16.msrb.mxu2 %v2941_v5  ;;  %v2966_v5 = vld [vmem:[#allocation6 + $0x1d4] sm:$0xf0] }
 0x109   :  { %2044 = vmatpush.bf16.msrb.mxu3 %v3037_v12  ;;  %2004 = vmatmul.bf16.vlgmr.msrb.gmra.mxu0 %v3667_v6  ;;  %v2969_v14 = vor.u32 %v3295_v8, %v2966_v5  ;;  %v3008_v8 = vld [vmem:[#allocation6 + $0x218] sm:$0xf]  ;;  %v3306_v5 = vld [vmem:[#allocation6 + $0x220] sm:$0xf0] }
 0x10a   :  { %2052 = vmatpush.bf16.msra.mxu0 %v2825_v63  ;;  %2066 = vmatpush.bf16.msra.mxu1 %v2921_v4  ;;  %v2858_v63 = vld [vmem:[#allocation6 + $0xfc] sm:$0xf0]  ;;  %v3077_v4 = vor.u32 %v3322_v10, %v3074_v0  ;;  %v2913_v10 = vor.u32 %v3282_v56, %v2912_v18  ;;  %v2933_v0 = vor.u32 %v3286_v58, %v2930_v31  ;;  %v3068_v18 = vld [vmem:[#allocation6 + $0x290] sm:$0xf]  ;;  %v3321_v56 = vld [vmem:[#allocation6 + $0x298] sm:$0xf0] }
 0x10b   :  { %2018 = vmatmul.bf16.vlgmr.msrb.gmra.mxu1 %v3669_v44  ;;  %v2861_v12 = vor.u32 %v3268_v25, %v2858_v63  ;;  %v2900_v25 = vld [vmem:[#allocation6 + $0x140] sm:$0xf]  ;;  %v3279_v63 = vld [vmem:[#allocation6 + $0x148] sm:$0xf0] }
 0x10c   :  { %2031 = vmatpush.bf16.msrb.mxu2 %v2929_v1  ;;  %v3050_v1 = vld [vmem:[#allocation6 + $0x27c] sm:$0xf0]  ;;  %v3243_v31 = vld [vmem:[#allocation6 + $0x28] sm:$0xf0] }
 0x10d   :  { %2045 = vmatpush.bf16.msrb.mxu3 %v3025_v46  ;;  %v2738_v46 = vld [vmem:[#allocation6 + $0xc] sm:$0xf0]  ;;  %v2756_v58 = vld [vmem:[#allocation6 + $0x20] sm:$0xf] }
 0x10e   :  { %2053 = vmatpush.bf16.msra.mxu0 %v2813_v29  ;;  %2067 = vmatpush.bf16.msra.mxu1 %v2909_v22  ;;  %v3292_v29 = vld [vmem:[#allocation6 + $0x1b4] sm:$0xf]  ;;  %v2954_v22 = vld [vmem:[#allocation6 + $0x1bc] sm:$0xf0]  ;;  %v2741_v45 = vor.u32 %v3238_v26, %v2738_v46  ;;  %v2889_v26 = vor.u32 %v3276_v17, %v2888_v16  ;;  %v3249_v46 = vld [vmem:[#allocation6 + $0x58] sm:$0xf0] }
 0x10f   :  { %2032 = vmatmul.bf16.vlgmr.msrb.gmra.mxu2 %v3681_v3  ;;  %v2957_v55 = vor.u32 %v3292_v29, %v2954_v22  ;;  %v2996_v29 = vld [vmem:[#allocation6 + $0x200] sm:$0xf]  ;;  %v3303_v22 = vld [vmem:[#allocation6 + $0x208] sm:$0xf0]  ;;  %v3288_v16 = vld [vmem:[#allocation6 + $0x190] sm:$0xf0] }
 0x110   :  { %2080 = vmatpush.bf16.msra.mxu2 %v3017_v53  ;;  %2046 = vmatmul.bf16.vlgmr.msrb.gmra.mxu3 %v3683_v42  ;;  %v3262_v53 = vld [vmem:[#allocation6 + $0xc4] sm:$0xf]  ;;  %v3032_v17 = vld [vmem:[#allocation6 + $0x248] sm:$0xf] }
 0x111   :  { %2094 = vmatpush.bf16.msra.mxu3 %v3113_v35  ;;  %v2828_v35 = vld [vmem:[#allocation6 + $0xb0] sm:$0xf]  ;;  %v2837_v49 = vor.u32 %v3262_v53, %v2834_v33  ;;  %v2997_v53 = vor.u32 %v3303_v22, %v2996_v29 }
 0x112   :  { %2054 = vmatpush.bf16.msra.mxu0 %v2801_v20  ;;  %2068 = vmatpush.bf16.msra.mxu1 %v2897_v41  ;;  %v3053_v20 = vor.u32 %v3316_v24, %v3050_v1  ;;  %v2942_v41 = vld [vmem:[#allocation6 + $0x1a4] sm:$0xf0]  ;;  %v2829_v50 = vor.u32 %v3261_v36, %v2828_v35  ;;  %v3092_v24 = vld [vmem:[#allocation6 + $0x2c0] sm:$0xf]  ;;  %v3327_v1 = vld [vmem:[#allocation6 + $0x2c8] sm:$0xf0] }
 0x113   :  { %v2945_v15 = vor.u32 %v3289_v40, %v2942_v41  ;;  %v2876_v33 = vld [vmem:[#allocation6 + $0x110] sm:$0xf]  ;;  %v3093_v35 = vor.u32 %v3327_v1, %v3092_v24  ;;  %v2984_v36 = vld [vmem:[#allocation6 + $0x1e8] sm:$0xf]  ;;  %v3324_v40 = vld [vmem:[#allocation6 + $0x2b0] sm:$0xf0] }
 0x114   :  { %2081 = vmatpush.bf16.msra.mxu2 %v3005_v48  ;;  %v3038_v48 = vld [vmem:[#allocation6 + $0x264] sm:$0xf0] }
 0x115   :  { %2095 = vmatpush.bf16.msra.mxu3 %v3101_v51  ;;  %v2816_v51 = vld [vmem:[#allocation6 + $0x98] sm:$0xf] }
 0x116   :  { %2055 = vmatpush.bf16.msra.mxu0 %v2789_v54  ;;  %2069 = vmatpush.bf16.msra.mxu1 %v2885_v30  ;;  %v3258_v54 = vld [vmem:[#allocation6 + $0xa0] sm:$0xf0]  ;;  %v3041_v30 = vor.u32 %v3313_v47, %v3038_v48  ;;  %v2985_v48 = vor.u32 %v3300_v38, %v2984_v36 }
 0x117   :  { %v2817_v61 = vor.u32 %v3258_v54, %v2816_v51  ;;  %v3246_v47 = vld [vmem:[#allocation6 + $0x40] sm:$0xf0]  ;;  %v3081_v51 = vor.u32 %v3324_v40, %v3080_v39 }
 0x118   :  { %2082 = vmatpush.bf16.msra.mxu2 %v2993_v59  ;;  %v3310_v59 = vld [vmem:[#allocation6 + $0x244] sm:$0xf] }
 0x119   :  { %2096 = vmatpush.bf16.msra.mxu3 %v3089_v60  ;;  %v3309_v60 = vld [vmem:[#allocation6 + $0x238] sm:$0xf0]  ;;  %v3029_v34 = vor.u32 %v3310_v59, %v3026_v7  ;;  %v2852_v7 = vld [vmem:[#allocation6 + $0xe0] sm:$0xf] }
 0x11a   :  { %2056 = vmatpush.bf16.msra.mxu0 %v2777_v62  ;;  %2070 = vmatpush.bf16.msra.mxu1 %v2873_v37  ;;  %v3333_v62 = vld [vmem:[#allocation6 + $0x2f8] sm:$0xf0]  ;;  %v2804_v37 = vld [vmem:[#allocation6 + $0x80] sm:$0xf] }
 0x11c   :  { %2083 = vmatpush.bf16.msra.mxu2 %v2981_v57  ;;  %v3021_v57 = vor.u32 %v3309_v60, %v3020_v43  ;;  %v3267_v43 = vld [vmem:[#allocation6 + $0xe8] sm:$0xf0]  ;;  %v3069_v60 = vor.u32 %v3321_v56, %v3068_v18 }
 0x11d   :  { %2097 = vmatpush.bf16.msra.mxu3 %v3077_v4  ;;  %v3117_v4 = vor.u32 %v3333_v62, %v3116_v21  ;;  %v3294_v21 = vld [vmem:[#allocation6 + $0x1c0] sm:$0xf0]  ;;  %v2757_v62 = vor.u32 %v3243_v31, %v2756_v58 }
 0x11e   :  { %2057 = vmatpush.bf16.msra.mxu0 %v2765_v9  ;;  %2071 = vmatpush.bf16.msra.mxu1 %v2861_v12  ;;  %v2805_v9 = vor.u32 %v3255_v2, %v2804_v37  ;;  %v2901_v12 = vor.u32 %v3279_v63, %v2900_v25  ;;  %v2853_v37 = vor.u32 %v3267_v43, %v2852_v7  ;;  %v2744_v2 = vld [vmem:[#allocation6 + $0x8] sm:$0xf]  ;;  %v3264_v63 = vld [vmem:[#allocation6 + $0xd0] sm:$0xf0] }
 0x11f   :  { %v2840_v25 = vld [vmem:[#allocation6 + $0xc8] sm:$0xf] }
 0x120   :  { %2084 = vmatpush.bf16.msra.mxu2 %v2969_v14  ;;  %v3009_v14 = vor.u32 %v3306_v5, %v3008_v8  ;;  %v2948_v8 = vld [vmem:[#allocation6 + $0x1a0] sm:$0xf]  ;;  %v3291_v5 = vld [vmem:[#allocation6 + $0x1a8] sm:$0xf0] }
 0x121   :  { %2098 = vmatpush.bf16.msra.mxu3 %v3065_v19  ;;  %v3105_v19 = vor.u32 %v3330_v28, %v3104_v11  ;;  %v3044_v11 = vld [vmem:[#allocation6 + $0x260] sm:$0xf]  ;;  %v3315_v28 = vld [vmem:[#allocation6 + $0x268] sm:$0xf0] }
 0x122   :  { %2058 = vmatpush.bf16.msra.mxu0 %v2753_v23  ;;  %2072 = vmatpush.bf16.msra.mxu1 %v2849_v32  ;;  %v2793_v23 = vor.u32 %v3252_v13, %v2792_v27  ;;  %v2780_v32 = vld [vmem:[#allocation6 + $0x50] sm:$0xf]  ;;  %v2949_v27 = vor.u32 %v3291_v5, %v2948_v8  ;;  %v3045_v13 = vor.u32 %v3315_v28, %v3044_v11 }
 0x124   :  { %2085 = vmatpush.bf16.msra.mxu2 %v2957_v55  ;;  %v3273_v55 = vld [vmem:[#allocation6 + $0x118] sm:$0xf0] }
 0x125   :  { %2099 = vmatpush.bf16.msra.mxu3 %v3053_v20  ;;  %v2781_v20 = vor.u32 %v3249_v46, %v2780_v32  ;;  %v2877_v41 = vor.u32 %v3273_v55, %v2876_v33 }
 0x126   :  { %2059 = vmatpush.bf16.msra.mxu0 %v2741_v45  ;;  %2073 = vmatpush.bf16.msra.mxu1 %v2837_v49  ;;  %v2768_v45 = vld [vmem:[#allocation6 + $0x38] sm:$0xf] }
 0x127   :  { %v2864_v49 = vld [vmem:[#allocation6 + $0xf8] sm:$0xf]  ;;  %v2769_v54 = vor.u32 %v3246_v47, %v2768_v45 }
 0x128   :  { %2086 = vmatpush.bf16.msra.mxu2 %v2945_v15  ;;  %v3297_v15 = vld [vmem:[#allocation6 + $0x1d8] sm:$0xf0] }
 0x129   :  { %2100 = vmatpush.bf16.msra.mxu3 %v3041_v30  ;;  %2060 = vmatmul.bf16.vlgmr.msra.gmra.mxu0 %v3667_v6 }
 0x12a   :  { %2108 = vmatpush.bf16.msrb.mxu0 %v2829_v50  ;;  %2122 = vmatpush.bf16.msrb.mxu1 %v2925_v52  ;;  %v3270_v50 = vld [vmem:[#allocation6 + $0x100] sm:$0xf0]  ;;  %v2972_v52 = vld [vmem:[#allocation6 + $0x1d0] sm:$0xf] }
 0x12b   :  { %2074 = vmatmul.bf16.vlgmr.msra.gmra.mxu1 %v3669_v44  ;;  %v2865_v30 = vor.u32 %v3270_v50, %v2864_v49  ;;  %v2973_v59 = vor.u32 %v3297_v15, %v2972_v52  ;;  %v3709_v15 = vld [vmem:[%s3744_s9] sm:$0x3f] }
 0x12c   :  { %2087 = vmatpush.bf16.msra.mxu2 %v2933_v0  ;;  %v3318_v0 = vld [vmem:[#allocation6 + $0x280] sm:$0xf0]  ;;  %v2174_v18 = vperm.slane %v3709_v15, 2  ;;  %v2173_v7 = vperm.slane %v3709_v15, 0 }
 0x12d   :  { %2101 = vmatpush.bf16.msra.mxu3 %v3029_v34  ;;  %v3240_v34 = vld [vmem:[#allocation6 + $0x10] sm:$0xf0] }
 0x12e   :  { %2109 = vmatpush.bf16.msrb.mxu0 %v2817_v61  ;;  %2123 = vmatpush.bf16.msrb.mxu1 %v2913_v10  ;;  %v2960_v61 = vld [vmem:[#allocation6 + $0x1b8] sm:$0xf] }
 0x12f   :  { %2088 = vmatmul.bf16.vlgmr.msra.gmra.mxu2 %v3681_v3  ;;  %v3056_v10 = vld [vmem:[#allocation6 + $0x278] sm:$0xf] }
 0x130   :  { %2136 = vmatpush.bf16.msrb.mxu2 %v3021_v57  ;;  %2102 = vmatmul.bf16.vlgmr.msra.gmra.mxu3 %v3683_v42  ;;  %v2961_v57 = vor.u32 %v3294_v21, %v2960_v61  ;;  %v2175_v61 = vperm.slane %v3709_v15, 4 }
 0x131   :  { %2150 = vmatpush.bf16.msrb.mxu3 %v3117_v4  ;;  %v3057_v4 = vor.u32 %v3318_v0, %v3056_v10 }
 0x132   :  { %2110 = vmatpush.bf16.msrb.mxu0 %v2805_v9  ;;  %2124 = vmatpush.bf16.msrb.mxu1 %v2901_v12  ;;  %v2745_v9 = vor.u32 %v3240_v34, %v2744_v2  ;;  %v2841_v12 = vor.u32 %v3264_v63, %v2840_v25  ;;  %v2179_v25 = vperm.slane %v2173_v7, 0  ;;  %v2181_v8 = vperm.slane %v2175_v61, 0 }
 0x134   :  { %2137 = vmatpush.bf16.msrb.mxu2 %v3009_v14  ;;  %v2936_v14 = vld [vmem:[#allocation6 + $0x188] sm:$0xf] }
 0x135   :  { %2151 = vmatpush.bf16.msrb.mxu3 %v3105_v19  ;;  %v3312_v19 = vld [vmem:[#allocation6 + $0x250] sm:$0xf0]  ;;  %v2937_v29 = vor.u32 %v3288_v16, %v2936_v14 }
 0x136   :  { %2111 = vmatpush.bf16.msrb.mxu0 %v2793_v23  ;;  %2125 = vmatpush.bf16.msrb.mxu1 %v2889_v26  ;;  %v3033_v22 = vor.u32 %v3312_v19, %v3032_v17 }
 0x138   :  { %2138 = vmatpush.bf16.msrb.mxu2 %v2997_v53 }
 0x139   :  { %2152 = vmatpush.bf16.msrb.mxu3 %v3093_v35 }
 0x13a   :  { %2112 = vmatpush.bf16.msrb.mxu0 %v2781_v20  ;;  %2126 = vmatpush.bf16.msrb.mxu1 %v2877_v41 }
 0x13c   :  { %2139 = vmatpush.bf16.msrb.mxu2 %v2985_v48 }
 0x13d   :  { %2153 = vmatpush.bf16.msrb.mxu3 %v3081_v51 }
 0x13e   :  { %2113 = vmatpush.bf16.msrb.mxu0 %v2769_v54  ;;  %2127 = vmatpush.bf16.msrb.mxu1 %v2865_v30 }
 0x140   :  { %2140 = vmatpush.bf16.msrb.mxu2 %v2973_v59 }
 0x141   :  { %2154 = vmatpush.bf16.msrb.mxu3 %v3069_v60  ;;  %v2180_v60 = vperm.slane %v2174_v18, 0 }
 0x142   :  { %2114 = vmatpush.bf16.msrb.mxu0 %v2757_v62  ;;  %2128 = vmatpush.bf16.msrb.mxu1 %v2853_v37 }
 0x144   :  { %2141 = vmatpush.bf16.msrb.mxu2 %v2961_v57 }
 0x145   :  { %2155 = vmatpush.bf16.msrb.mxu3 %v3057_v4  ;;  %v1183_v23 = vpop.f32.mrf.mxu0  ;;  %v1197_v24 = vpop.f32.mrf.mxu1 }
 0x146   :  { %2115 = vmatpush.bf16.msrb.mxu0 %v2745_v9  ;;  %2129 = vmatpush.bf16.msrb.mxu1 %v2841_v12 }
 0x148   :  { %2142 = vmatpush.bf16.msrb.mxu2 %v2949_v27 }
 0x149   :  { %2156 = vmatpush.bf16.msrb.mxu3 %v3045_v13  ;;  %2116 = vmatmul.bf16.vlgmr.msrb.gmra.mxu0 %v3667_v6 }
 0x14a   :  { %2130 = vmatmul.bf16.vlgmr.msrb.gmra.mxu1 %v3669_v44  ;;  %v654_v44 = vld [vmem:[%s3741_s6] sm:$0x7] }
 0x14b   :  { %v657_v36 = vperm.slane %v654_v44, 1  ;;  %v656_v38 = vperm.slane %v654_v44, 0  ;;  %v658_v49 = vperm.slane %v654_v44, 2 }
 0x14c   :  { %2143 = vmatpush.bf16.msrb.mxu2 %v2937_v29 }
 0x14d   :  { %2157 = vmatpush.bf16.msrb.mxu3 %v3033_v22  ;;  %v1185_v1 = vpop.f32.mrf.mxu0  ;;  %v1199_v26 = vpop.f32.mrf.mxu1  ;;  %v1184_v40 = vadd.f32 %v1183_v23, %v656_v38 }
 0x14e   :  { %v1186_v56 = vadd.f32 %v1185_v1, %v656_v38 }
 0x14f   :  { %2144 = vmatmul.bf16.vlgmr.msrb.gmra.mxu2 %v3681_v3  ;;  %v1198_v47 = vadd.f32 %v1197_v24, %v1184_v40 }
 0x150   :  { %2158 = vmatmul.bf16.vlgmr.msrb.gmra.mxu3 %v3683_v42  ;;  %v1200_v21 = vadd.f32 %v1199_v26, %v1186_v56 }
 0x152   :  { %v1211_v32 = vpop.f32.mrf.mxu2  ;;  %v1225_v46 = vpop.f32.mrf.mxu3 }
 0x153   :  { %v1212_v52 = vadd.f32 %v1211_v32, %v1198_v47  ;;  %v1476_v47 = vld [vmem:[%s3743_s8] sm:$0x7] }
 0x154   :  { %v1480_v7 = vperm.slane %v1476_v47, 2 }
 0x155   :  { %v1239_v53 = vpop.f32.mrf.mxu0  ;;  %v1226_v59 = vadd.f32 %v1225_v46, %v1212_v52 }
 0x156   :  { %v1253_v55 = vpop.f32.mrf.mxu1  ;;  %v1240_v39 = vadd.f32 %v1239_v53, %v657_v36 }
 0x157   :  { %v1342_v57 = vmax.f32 %v1226_v59, 0.0 }
 0x158   :  { %v1254_v41 = vadd.f32 %v1253_v55, %v1240_v39 }
 0x159   :  { %v2182_v12 = vmul.f32 %v2179_v25, %v1342_v57  ;;  %v2196_v57 = vperm.slane %v3709_v15, 1 }
 0x15a   :  { %v1213_v33 = vpop.f32.mrf.mxu2  ;;  %v1227_v35 = vpop.f32.mrf.mxu3 }
 0x15b   :  { %v1214_v63 = vadd.f32 %v1213_v33, %v1200_v21 }
 0x15d   :  { %v1241_v6 = vpop.f32.mrf.mxu0  ;;  %v1228_v27 = vadd.f32 %v1227_v35, %v1214_v63 }
 0x15e   :  { %v1255_v42 = vpop.f32.mrf.mxu1  ;;  %v1242_v54 = vadd.f32 %v1241_v6, %v657_v36 }
 0x15f   :  { %v1345_v23 = vmax.f32 %v1228_v27, 0.0 }
 0x160   :  { %v1256_v43 = vadd.f32 %v1255_v42, %v1242_v54 }
 0x161   :  { %v2185_v53 = vmul.f32 %v2179_v25, %v1345_v23 }
 0x162   :  { %v1267_v20 = vpop.f32.mrf.mxu2  ;;  %v1281_v3 = vpop.f32.mrf.mxu3 }
 0x163   :  { %v1268_v48 = vadd.f32 %v1267_v20, %v1254_v41 }
 0x165   :  { %v1282_v30 = vadd.f32 %v1281_v3, %v1268_v48  ;;  %v1479_v48 = vperm.slane %v1476_v47, 1 }
 0x166   :  { %v1295_v45 = vpop.f32.mrf.mxu0 }
 0x167   :  { %v1296_v58 = vadd.f32 %v1295_v45, %v658_v49  ;;  %v1343_v62 = vmax.f32 %v1282_v30, 0.0 }
 0x168   :  { %v1309_v31 = vpop.f32.mrf.mxu1 }
 0x169   :  { %v1310_v10 = vadd.f32 %v1309_v31, %v1296_v58  ;;  %v2183_v5 = vmul.f32 %v2180_v60, %v1343_v62 }
 0x16a   :  { %v1269_v50 = vpop.f32.mrf.mxu2  ;;  %v1283_v51 = vpop.f32.mrf.mxu3 }
 0x16b   :  { %v1270_v0 = vadd.f32 %v1269_v50, %v1256_v43  ;;  %v2188_v29 = vadd.f32 %v2183_v5, %v2182_v12 }
 0x16d   :  { %v1284_v9 = vadd.f32 %v1283_v51, %v1270_v0  ;;  %v1478_v51 = vperm.slane %v1476_v47, 0  ;;  %v2197_v0 = vperm.slane %v3709_v15, 3 }
 0x16e   :  { %v1297_v37 = vpop.f32.mrf.mxu0 }
 0x16f   :  { %v1298_v11 = vadd.f32 %v1297_v37, %v658_v49  ;;  %v1346_v16 = vmax.f32 %v1284_v9, 0.0  ;;  %v2203_v5 = vperm.slane %v2197_v0, 1 }
 0x170   :  { %v1311_v14 = vpop.f32.mrf.mxu1 }
 0x171   :  { %v1312_v17 = vadd.f32 %v1311_v14, %v1298_v11  ;;  %v2186_v32 = vmul.f32 %v2180_v60, %v1346_v16 }
 0x172   :  { %v1323_v2 = vpop.f32.mrf.mxu2 }
 0x173   :  { %v1337_v34 = vpop.f32.mrf.mxu3  ;;  %v1324_v4 = vadd.f32 %v1323_v2, %v1310_v10  ;;  %v2192_v6 = vadd.f32 %v2186_v32, %v2185_v53 }
 0x175   :  { %v1338_v28 = vadd.f32 %v1337_v34, %v1324_v4  ;;  %v2198_v4 = vperm.slane %v3709_v15, 5 }
 0x177   :  { %v1344_v13 = vmax.f32 %v1338_v28, 0.0 }
 0x179   :  { %v2184_v19 = vmul.f32 %v2181_v8, %v1344_v13  ;;  %v2202_v13 = vperm.slane %v2196_v57, 1 }
 0x17a   :  { %v1325_v22 = vpop.f32.mrf.mxu2 }
 0x17b   :  { %v1326_v24 = vadd.f32 %v1325_v22, %v1312_v17  ;;  %v2189_v1 = vadd.f32 %v2188_v29, %v2184_v19  ;;  %v1339_v26 = vpop.f32.mrf.mxu3  ;;  %v2204_v19 = vperm.slane %v2198_v4, 1 }
 0x17d   :  { %v1340_v46 = vadd.f32 %v1339_v26, %v1326_v24  ;;  %2190 = vadd.xlane.f32.xlu0 %v2189_v1 }
 0x17f   :  { %v1347_v33 = vmax.f32 %v1340_v46, 0.0 }
 0x181   :  { %v2187_v55 = vmul.f32 %v2181_v8, %v1347_v33 }
 0x183   :  { %v2193_v44 = vadd.f32 %v2192_v6, %v2187_v55 }
 0x185   :  { %2194 = vadd.xlane.f32.xlu0 %v2193_v44 }
 0x186   :  { %v2005_v35 = vpop.f32.mrf.mxu0 }
 0x187   :  { %v2006_v18 = vadd.f32 %v2005_v35, %v1478_v51 }
 0x188   :  { %v2019_v36 = vpop.f32.mrf.mxu1 }
 0x189   :  { %v2020_v31 = vadd.f32 %v2019_v36, %v2006_v18 }
 0x18e   :  { %v2007_v38 = vpop.f32.mrf.mxu0 }
 0x18f   :  { %v2008_v62 = vadd.f32 %v2007_v38, %v1478_v51 }
 0x190   :  { %v2021_v39 = vpop.f32.mrf.mxu1 }
 0x191   :  { %v2022_v63 = vadd.f32 %v2021_v39, %v2008_v62 }
 0x192   :  { %v2033_v20 = vpop.f32.mrf.mxu2 }
 0x193   :  { %v2047_v3 = vpop.f32.mrf.mxu3  ;;  %v2034_v60 = vadd.f32 %v2033_v20, %v2020_v31 }
 0x195   :  { %v2048_v34 = vadd.f32 %v2047_v3, %v2034_v60 }
 0x197   :  { %v2164_v27 = vmax.f32 %v2048_v34, 0.0 }
 0x199   :  { %v2205_v1 = vmul.f32 %v2202_v13, %v2164_v27 }
 0x19a   :  { %v2035_v40 = vpop.f32.mrf.mxu2 }
 0x19b   :  { %v2049_v41 = vpop.f32.mrf.mxu3  ;;  %v2036_v14 = vadd.f32 %v2035_v40, %v2022_v63 }
 0x19d   :  { %v2050_v26 = vadd.f32 %v2049_v41, %v2036_v14  ;;  %v3341_v41 = vld [vmem:[%s3745_s10] ss:$0 sm:$0xff] }
 0x19f   :  { %v2167_v44 = vmax.f32 %v2050_v26, 0.0 }
 0x1a1   :  { %v2208_v39 = vmul.f32 %v2202_v13, %v2167_v44 }
 0x1a6   :  { %v2061_v42 = vpop.f32.mrf.mxu0 }
 0x1a7   :  { %v2062_v54 = vadd.f32 %v2061_v42, %v1479_v48 }
 0x1a8   :  { %v2075_v45 = vpop.f32.mrf.mxu1 }
 0x1a9   :  { %v2076_v30 = vadd.f32 %v2075_v45, %v2062_v54 }
 0x1ae   :  { %v2063_v49 = vpop.f32.mrf.mxu0 }
 0x1af   :  { %v2064_v61 = vadd.f32 %v2063_v49, %v1479_v48 }
 0x1b0   :  { %v2077_v56 = vpop.f32.mrf.mxu1 }
 0x1b1   :  { %v2078_v25 = vadd.f32 %v2077_v56, %v2064_v61 }
 0x1b2   :  { %v2089_v50 = vpop.f32.mrf.mxu2 }
 0x1b3   :  { %v2103_v52 = vpop.f32.mrf.mxu3  ;;  %v2090_v59 = vadd.f32 %v2089_v50, %v2076_v30 }
 0x1b5   :  { %v2104_v10 = vadd.f32 %v2103_v52, %v2090_v59 }
 0x1b7   :  { %v2165_v8 = vmax.f32 %v2104_v10, 0.0 }
 0x1b9   :  { %v2206_v29 = vmul.f32 %v2203_v5, %v2165_v8 }
 0x1ba   :  { %v2091_v43 = vpop.f32.mrf.mxu2 }
 0x1bb   :  { %v2105_v21 = vpop.f32.mrf.mxu3  ;;  %v2092_v9 = vadd.f32 %v2091_v43, %v2078_v25  ;;  %v2211_v55 = vadd.f32 %v2206_v29, %v2205_v1 }
 0x1bd   :  { %v2106_v22 = vadd.f32 %v2105_v21, %v2092_v9 }
 0x1bf   :  { %v2168_v46 = vmax.f32 %v2106_v22, 0.0 }
 0x1c1   :  { %v2209_v20 = vmul.f32 %v2203_v5, %v2168_v46 }
 0x1c3   :  { %v2215_v45 = vadd.f32 %v2209_v20, %v2208_v39 }
 0x1c6   :  { %v2117_v58 = vpop.f32.mrf.mxu0 }
 0x1c7   :  { %v2118_v37 = vadd.f32 %v2117_v58, %v1480_v7  ;;  %v2131_v2 = vpop.f32.mrf.mxu1 }
 0x1c9   :  { %v2132_v11 = vadd.f32 %v2131_v2, %v2118_v37 }
 0x1ce   :  { %v2119_v28 = vpop.f32.mrf.mxu0 }
 0x1cf   :  { %v2120_v23 = vadd.f32 %v2119_v28, %v1480_v7  ;;  %v2133_v15 = vpop.f32.mrf.mxu1 }
 0x1d1   :  { %v2134_v53 = vadd.f32 %v2133_v15, %v2120_v23 }
 0x1d2   :  { %v2145_v12 = vpop.f32.mrf.mxu2 }
 0x1d3   :  { %v2146_v16 = vadd.f32 %v2145_v12, %v2132_v11  ;;  %v2159_v17 = vpop.f32.mrf.mxu3 }
 0x1d5   :  { %v2160_v24 = vadd.f32 %v2159_v17, %v2146_v16 }
 0x1d7   :  { %v2166_v32 = vmax.f32 %v2160_v24, 0.0 }
 0x1d9   :  { %v2207_v33 = vmul.f32 %v2204_v19, %v2166_v32 }
 0x1da   :  { %v2147_v6 = vpop.f32.mrf.mxu2 }
 0x1db   :  { %v2148_v35 = vadd.f32 %v2147_v6, %v2134_v53  ;;  %v2212_v36 = vadd.f32 %v2211_v55, %v2207_v33  ;;  %v2161_v38 = vpop.f32.mrf.mxu3 }
 0x1dd   :  { %v2162_v3 = vadd.f32 %v2161_v38, %v2148_v35  ;;  %2213 = vadd.xlane.f32.xlu1 %v2212_v36 }
 0x1df   :  { %v2169_v42 = vmax.f32 %v2162_v3, 0.0 }
 0x1e1   :  { %v2210_v40 = vmul.f32 %v2204_v19, %v2169_v42 }
 0x1e3   :  { %v2216_v47 = vadd.f32 %v2215_v45, %v2210_v40 }
 0x1e5   :  { %2217 = vadd.xlane.f32.xlu1 %v2216_v47 }
 0x1f0   :  { %v2191_v48 = vpop.xlane.xlu0 %2190 }
 0x1f1   :  { %v2222_v49 = vadd.f32 %v3341_v41, %v2191_v48 }
 0x1f3   :  { %2225 = vst.msk [vmem:[%s3746_s11] sm:$0xff] %vm2224_vm2, %v2222_v49 }
 0x1f8   :  { %v2195_v50 = vpop.xlane.xlu0 %2194 }
 0x1f9   :  { %v2223_v51 = vadd.f32 %v3341_v41, %v2195_v50 }
 0x1fb   :  { %2226 = vst.msk [vmem:[%s3746_s11 + $0x8] sm:$0xff] %vm2224_vm2, %v2223_v51 }
 0x250   :  { %v2214_v52 = vpop.xlane.xlu1 %2213 }
 0x251   :  { %v2227_v54 = vadd.f32 %v3341_v41, %v2214_v52 }
 0x253   :  { %2230 = vst.msk [vmem:[%s3746_s11] sm:$0xff] %vm2229_vm3, %v2227_v54 }
 0x258   :  { %v2218_v18 = vpop.xlane.xlu1 %2217 }
 0x259   :  { %v2228_v56 = vadd.f32 %v3341_v41, %v2218_v18 }
 0x25b   :  { %2231 = vst.msk [vmem:[%s3746_s11 + $0x8] sm:$0xff] %vm2229_vm3, %v2228_v56 }
 0x25c   :  { %2236 = vsyncpa [#allocation3], 1 }
 0x25d   :  { %2237 = vsyncpa [#allocation5], 1 }

</bundles_post_ra>
